<compile_context>
chip_gen: v5e
topology: v5e:2x2
jax: 0.10.0
libtpu: 0.0.40
codegen_flags: <defaults>
</compile_context>

<pallas_src>
import jax
import jax.numpy as jnp
from jax.experimental import pallas as pl
from jax.experimental.pallas import tpu as pltpu

GATE = 128  # per-gate lane slab width for the fused GRU gate matmuls


# ---------------------------------------------------------------------------
# Fused Pallas kernel
# ---------------------------------------------------------------------------
def _critic_kernel(pt_ref, wc_ref, w1_ref, w2_ref, wgru_ref, sp_ref, hm_ref,
                   val_ref, hout_ref):
    B = pt_ref.shape[0]
    C = wc_ref.shape[0]            # conv out channels (hidden // 2)
    H = w2_ref.shape[0]            # hidden size
    G = wgru_ref.shape[2] // 3     # 128-lane gate slab width

    # --- Conv2d (+bias via ones-row of pt) + ReLU: one batched MXU matmul.
    wc = wc_ref[...]                                             # (C, K+1) bf16
    wc_b = jnp.broadcast_to(wc[None], (B,) + wc.shape)           # (B, C, K+1)
    act = jnp.einsum('bck,bkp->bcp', wc_b, pt_ref[...],
                     preferred_element_type=jnp.float32)         # (B, C, P) f32
    act = jnp.maximum(act, 0.0)

    # --- Flatten + fc1 + ReLU.  Torch flatten order is (c, p); w1 is stored
    #     lane-dense as (C, H, P), so each channel is an NT matmul over P.
    h1 = jnp.zeros((B, H), jnp.float32)
    for c in range(C):
        ac = act[:, c, :].astype(jnp.bfloat16)                   # (B, P)
        h1 = h1 + jax.lax.dot_general(
            ac, w1_ref[c], (((1,), (1,)), ((), ())),             # contract P with P
            preferred_element_type=jnp.float32)
    h1 = jnp.maximum(h1 + sp_ref[0:1, :H], 0.0)

    # --- fc2 + ReLU
    h2 = jnp.maximum(
        jnp.dot(h1, w2_ref[...], preferred_element_type=jnp.float32)
        + sp_ref[1:2, :H], 0.0)

    # --- Single-step GRU cell.  Gates [r|z|n] fused into two matmuls with
    #     128-lane slabs per gate (zero padded), so gate slices are tile-aligned.
    hprev = hm_ref[:, :H] * hm_ref[:, H:H + 1]                   # h0 * masks
    gi = jnp.dot(h2, wgru_ref[0], preferred_element_type=jnp.float32) + sp_ref[2:3, :]
    gh = jnp.dot(hprev, wgru_ref[1], preferred_element_type=jnp.float32) + sp_ref[3:4, :]
    s = gi + gh
    r = jax.nn.sigmoid(s[:, 0:G])                                # full 128-lane slab
    z = jax.nn.sigmoid(s[:, G:2 * G])[:, :H]
    n = jnp.tanh(gi[:, 2 * G:3 * G] + r * gh[:, 2 * G:3 * G])[:, :H]
    hnew = (1.0 - z) * n + z * hprev
    hout_ref[...] = hnew                                         # raw GRU state out

    # --- LayerNorm(eps=1e-5) + v_out (VPU dot, no N=1 MXU matmul)
    mu = jnp.mean(hnew, axis=-1, keepdims=True)
    var = jnp.mean((hnew - mu) ** 2, axis=-1, keepdims=True)
    xn = (hnew - mu) * jax.lax.rsqrt(var + 1e-5)
    xn = xn * sp_ref[4:5, :H] + sp_ref[5:6, :H]
    val_ref[...] = (jnp.sum(xn * sp_ref[6:7, :H], axis=-1, keepdims=True)
                    + sp_ref[7:8, 0:1])


# ---------------------------------------------------------------------------
# Pallas wrapper
# ---------------------------------------------------------------------------
def _full_spec(shape):
    nd = len(shape)
    return pl.BlockSpec(shape, lambda i, _n=nd: (0,) * _n)


def critic_fused_call(pt, hm, p):
    B = pt.shape[0]
    H = p["w2"].shape[0]
    ins = (pt, p["wc"], p["w1"], p["w2"], p["wgru"], p["sp"], hm)
    out_shapes = (jax.ShapeDtypeStruct((B, 1), jnp.float32),
                  jax.ShapeDtypeStruct((B, H), jnp.float32))
    return pl.pallas_call(
        _critic_kernel,
        grid=(1,),
        in_specs=[_full_spec(x.shape) for x in ins],
        out_specs=tuple(_full_spec(s.shape) for s in out_shapes),
        out_shape=out_shapes,
        compiler_params=pltpu.CompilerParams(
            dimension_semantics=("arbitrary",),
            vmem_limit_bytes=32 * 1024 * 1024),
    )(*ins)


# ---------------------------------------------------------------------------
# Glue: im2col (+ bias ones-row), parameter packing, forward
# ---------------------------------------------------------------------------
def im2col_aug(x, kh, kw):
    """(B, C, H, W) -> (B, C*kh*kw + 1, OH*OW).

    Row order (c, kh, kw) matches torch Conv2d weight.reshape(Cout, -1) columns;
    last row is all-ones so the conv bias folds into the matmul."""
    B, C, H, W = x.shape
    OH, OW = H - kh + 1, W - kw + 1
    rows = []
    for c in range(C):
        for i in range(kh):
            for j in range(kw):
                rows.append(x[:, c, i:i + OH, j:j + OW].reshape(B, OH * OW))
    rows.append(jnp.ones((B, OH * OW), x.dtype))
    return jnp.stack(rows, axis=1)


def init_params(key, C=4, Hin=16, Win=16, hidden=32, kernel=3):
    Cout = hidden // 2
    OH, OW = Hin - kernel + 1, Win - kernel + 1
    P = OH * OW
    F = Cout * P
    keys = jax.random.split(key, 10)

    def rn(k, shape, scale):
        return (scale * jax.random.normal(k, shape)).astype(jnp.float32)

    # Conv2d: torch weight (Cout, C, kh, kw); fold /255 into it; append bias column.
    wconv_t = rn(keys[0], (Cout, C, kernel, kernel), 0.1)
    b_conv = rn(keys[6], (Cout,), 0.01)
    wc = jnp.concatenate(
        [wconv_t.reshape(Cout, C * kernel * kernel) * (1.0 / 255.0), b_conv[:, None]],
        axis=1).astype(jnp.bfloat16)                              # (Cout, K+1)

    # fc1: torch (hidden, F), F flattened in (c_out, oh, ow) order.
    # Store lane-dense as (Cout, hidden, P) bf16 -> in-kernel NT matmul per channel.
    w1_t = rn(keys[1], (hidden, F), 0.02)
    w1 = jnp.transpose(w1_t.reshape(hidden, Cout, P), (1, 0, 2)).astype(jnp.bfloat16)
    b1 = rn(keys[7], (hidden,), 0.01)

    # fc2
    w2 = rn(keys[2], (hidden, hidden), 0.1).T                     # (H, H) for x @ W
    b2 = rn(keys[8], (hidden,), 0.01)

    # GRU: torch weight_ih_l0 / weight_hh_l0 are (3H, H) stacked [r|z|n].
    # Lay each gate out in its own 128-lane slab (zero padded) -> (H, 384).
    w_ih_t = rn(keys[3], (3 * hidden, hidden), 0.1)
    w_hh_t = rn(keys[4], (3 * hidden, hidden), 0.1)
    b_ih = rn(keys[9], (3 * hidden,), 0.01)
    b_hh = jnp.zeros((3 * hidden,), jnp.float32)

    def gate_slab_w(wt):
        slab = jnp.zeros((hidden, 3 * GATE), jnp.float32)
        for g in range(3):
            slab = slab.at[:, g * GATE:g * GATE + hidden].set(
                wt[g * hidden:(g + 1) * hidden, :].T)
        return slab

    def gate_slab_b(bt):
        slab = jnp.zeros((3 * GATE,), jnp.float32)
        for g in range(3):
            slab = slab.at[g * GATE:g * GATE + hidden].set(
                bt[g * hidden:(g + 1) * hidden])
        return slab

    wgru = jnp.stack([gate_slab_w(w_ih_t), gate_slab_w(w_hh_t)], axis=0)  # (2, H, 384)

    # v_out (bias zero per init_), LayerNorm gamma=1 beta=0.
    wv_row = rn(keys[5], (hidden,), 0.1)
    bv = jnp.zeros((), jnp.float32)

    # Packed small params: one lane-dense (8, 384) array (one DMA descriptor).
    sp = jnp.zeros((8, 3 * GATE), jnp.float32)
    sp = sp.at[0, :hidden].set(b1)
    sp = sp.at[1, :hidden].set(b2)
    sp = sp.at[2, :].set(gate_slab_b(b_ih))
    sp = sp.at[3, :].set(gate_slab_b(b_hh))
    sp = sp.at[4, :hidden].set(jnp.ones((hidden,), jnp.float32))  # LN gamma
    sp = sp.at[5, :hidden].set(jnp.zeros((hidden,), jnp.float32))  # LN beta
    sp = sp.at[6, :hidden].set(wv_row)
    sp = sp.at[7, 0].set(bv)

    return dict(wc=wc, w1=w1, w2=w2, wgru=wgru, sp=sp)


@jax.jit
def r_critic_forward(share_obs, rnn_states, masks, params):
    """Mirrors R_Critic.forward: returns (values (B,1), rnn_states (B, N=1, H))."""
    share_obs = share_obs.astype(jnp.float32)
    rnn_states = rnn_states.astype(jnp.float32)
    masks = masks.astype(jnp.float32)

    pt = im2col_aug(share_obs, 3, 3).astype(jnp.bfloat16)   # (B, K+1, P) patch gather
    hm = jnp.concatenate([rnn_states[:, 0, :], masks], axis=-1)   # packed h0 | mask
    values, h_new = critic_fused_call(pt, hm, params)       # one fused Pallas kernel
    return values, h_new[:, None, :]


# TODO(synk): MLPBase / attention (use_attn_internal), grid_goal tuple output,
#             mixed-obs dict path, recurrent_N > 1 and the T>1 sequence branch of
#             RNNLayer are not reproduced; only the standard 3-D share_obs CNNBase
#             + single-step GRU RNNLayer + v_out path is implemented.

if __name__ == "__main__":
    key = jax.random.PRNGKey(0)
    k_obs, k_h, k_p = jax.random.split(key, 3)

    B, C, Hin, Win, hidden, rec_N = 2, 4, 16, 16, 32, 1
    share_obs = (jax.random.uniform(k_obs, (B, C, Hin, Win)) * 255.0).astype(jnp.float32)
    rnn_states = jax.random.normal(k_h, (B, rec_N, hidden)).astype(jnp.float32)
    masks = jnp.ones((B, 1), jnp.float32)

    params = init_params(k_p, C=C, Hin=Hin, Win=Win, hidden=hidden, kernel=3)

    values, rnn_states_out = r_critic_forward(share_obs, rnn_states, masks, params)
    jax.block_until_ready((values, rnn_states_out))

    assert values.shape == (B, 1) and rnn_states_out.shape == (B, rec_N, hidden)
    assert bool(jnp.all(jnp.isfinite(values))) and bool(jnp.all(jnp.isfinite(rnn_states_out)))
    print("KERNEL_OK")
</pallas_src>

<mosaic_0001>
module attributes {stable_mosaic.version = 11 : i64} {
  func.func @_critic_kernel(%arg0: i32, %arg1: memref<2x37x196xbf16, #tpu.memory_space<vmem>>, %arg2: memref<16x37xbf16, #tpu.memory_space<vmem>>, %arg3: memref<16x32x196xbf16, #tpu.memory_space<vmem>>, %arg4: memref<32x32xf32, #tpu.memory_space<vmem>>, %arg5: memref<2x32x384xf32, #tpu.memory_space<vmem>>, %arg6: memref<8x384xf32, #tpu.memory_space<vmem>>, %arg7: memref<2x33xf32, #tpu.memory_space<vmem>>, %arg8: memref<2x1xf32, #tpu.memory_space<vmem>>, %arg9: memref<2x32xf32, #tpu.memory_space<vmem>>) attributes {dimension_semantics = [#tpu.dimension_semantics<arbitrary>], iteration_bounds = array<i64: 1>, scalar_prefetch = 0 : i64, scratch_operands = 0 : i64, tpu.core_type = #tpu.core_type<tc>, window_params = [{pipeline_mode = #tpu.pipeline_mode<synchronous>, transform_indices = @transform_0, window_bounds = array<i64: 2, 37, 196>}, {pipeline_mode = #tpu.pipeline_mode<synchronous>, transform_indices = @transform_1, window_bounds = array<i64: 16, 37>}, {pipeline_mode = #tpu.pipeline_mode<synchronous>, transform_indices = @transform_2, window_bounds = array<i64: 16, 32, 196>}, {pipeline_mode = #tpu.pipeline_mode<synchronous>, transform_indices = @transform_3, window_bounds = array<i64: 32, 32>}, {pipeline_mode = #tpu.pipeline_mode<synchronous>, transform_indices = @transform_4, window_bounds = array<i64: 2, 32, 384>}, {pipeline_mode = #tpu.pipeline_mode<synchronous>, transform_indices = @transform_5, window_bounds = array<i64: 8, 384>}, {pipeline_mode = #tpu.pipeline_mode<synchronous>, transform_indices = @transform_6, window_bounds = array<i64: 2, 33>}, {pipeline_mode = #tpu.pipeline_mode<synchronous>, transform_indices = @transform_7, window_bounds = array<i64: 2, 1>}, {pipeline_mode = #tpu.pipeline_mode<synchronous>, transform_indices = @transform_8, window_bounds = array<i64: 2, 32>}]} {
    %c0 = arith.constant 0 : index
    %c0_0 = arith.constant 0 : index
    %0 = vector.load %arg2[%c0, %c0_0] : memref<16x37xbf16, #tpu.memory_space<vmem>>, vector<16x37xbf16>
    %1 = vector.shape_cast %0 : vector<16x37xbf16> to vector<1x16x37xbf16>
    %2 = vector.shape_cast %1 : vector<1x16x37xbf16> to vector<1x16x37xbf16>
    %3 = vector.broadcast %2 : vector<1x16x37xbf16> to vector<2x16x37xbf16>
    %c0_1 = arith.constant 0 : index
    %c0_2 = arith.constant 0 : index
    %c0_3 = arith.constant 0 : index
    %4 = vector.load %arg1[%c0_1, %c0_2, %c0_3] : memref<2x37x196xbf16, #tpu.memory_space<vmem>>, vector<2x37x196xbf16>
    "tpu.trace_start"() <{level = 10 : i32, message = "bck,bkp->bcp"}> : () -> ()
    %cst = arith.constant dense<0.000000e+00> : vector<2x16x196xf32>
    %5 = tpu.matmul %3, %4, %cst {dimension_numbers = #tpu.dot_dimension_numbers<[2], [1], [1], [2], [0, 0, 0, 1, 1, 2], [0], [0]>} : vector<2x16x37xbf16>, vector<2x37x196xbf16>, vector<2x16x196xf32> -> vector<2x16x196xf32>
    "tpu.trace_stop"() : () -> ()
    %cst_4 = arith.constant 0.000000e+00 : f32
    %6 = vector.broadcast %cst_4 : f32 to vector<2x16x196xf32>
    %7 = arith.maximumf %5, %6 : vector<2x16x196xf32>
    %cst_5 = arith.constant 0.000000e+00 : f32
    %8 = vector.broadcast %cst_5 : f32 to vector<2x32xf32>
    %9 = vector.extract_strided_slice %7 {offsets = [0, 0, 0], sizes = [2, 1, 196], strides = [1, 1, 1]} : vector<2x16x196xf32> to vector<2x1x196xf32>
    %10 = vector.shape_cast %9 : vector<2x1x196xf32> to vector<2x196xf32>
    %11 = arith.truncf %10 : vector<2x196xf32> to vector<2x196xbf16>
    %c0_6 = arith.constant 0 : index
    %c0_7 = arith.constant 0 : index
    %c0_8 = arith.constant 0 : index
    %12 = vector.load %arg3[%c0_6, %c0_7, %c0_8] : memref<16x32x196xbf16, #tpu.memory_space<vmem>>, vector<1x32x196xbf16>
    %13 = vector.shape_cast %12 : vector<1x32x196xbf16> to vector<32x196xbf16>
    %cst_9 = arith.constant dense<0.000000e+00> : vector<2x32xf32>
    %14 = tpu.matmul %11, %13, %cst_9 {dimension_numbers = #tpu.dot_dimension_numbers<[1], [1], [0], [0], [0, 0, 1, 0], [], []>} : vector<2x196xbf16>, vector<32x196xbf16>, vector<2x32xf32> -> vector<2x32xf32>
    %15 = arith.addf %8, %14 : vector<2x32xf32>
    %16 = vector.extract_strided_slice %7 {offsets = [0, 1, 0], sizes = [2, 1, 196], strides = [1, 1, 1]} : vector<2x16x196xf32> to vector<2x1x196xf32>
    %17 = vector.shape_cast %16 : vector<2x1x196xf32> to vector<2x196xf32>
    %18 = arith.truncf %17 : vector<2x196xf32> to vector<2x196xbf16>
    %c1 = arith.constant 1 : index
    %c0_10 = arith.constant 0 : index
    %c0_11 = arith.constant 0 : index
    %19 = vector.load %arg3[%c1, %c0_10, %c0_11] : memref<16x32x196xbf16, #tpu.memory_space<vmem>>, vector<1x32x196xbf16>
    %20 = vector.shape_cast %19 : vector<1x32x196xbf16> to vector<32x196xbf16>
    %cst_12 = arith.constant dense<0.000000e+00> : vector<2x32xf32>
    %21 = tpu.matmul %18, %20, %cst_12 {dimension_numbers = #tpu.dot_dimension_numbers<[1], [1], [0], [0], [0, 0, 1, 0], [], []>} : vector<2x196xbf16>, vector<32x196xbf16>, vector<2x32xf32> -> vector<2x32xf32>
    %22 = arith.addf %15, %21 : vector<2x32xf32>
    %23 = vector.extract_strided_slice %7 {offsets = [0, 2, 0], sizes = [2, 1, 196], strides = [1, 1, 1]} : vector<2x16x196xf32> to vector<2x1x196xf32>
    %24 = vector.shape_cast %23 : vector<2x1x196xf32> to vector<2x196xf32>
    %25 = arith.truncf %24 : vector<2x196xf32> to vector<2x196xbf16>
    %c2 = arith.constant 2 : index
    %c0_13 = arith.constant 0 : index
    %c0_14 = arith.constant 0 : index
    %26 = vector.load %arg3[%c2, %c0_13, %c0_14] : memref<16x32x196xbf16, #tpu.memory_space<vmem>>, vector<1x32x196xbf16>
    %27 = vector.shape_cast %26 : vector<1x32x196xbf16> to vector<32x196xbf16>
    %cst_15 = arith.constant dense<0.000000e+00> : vector<2x32xf32>
    %28 = tpu.matmul %25, %27, %cst_15 {dimension_numbers = #tpu.dot_dimension_numbers<[1], [1], [0], [0], [0, 0, 1, 0], [], []>} : vector<2x196xbf16>, vector<32x196xbf16>, vector<2x32xf32> -> vector<2x32xf32>
    %29 = arith.addf %22, %28 : vector<2x32xf32>
    %30 = vector.extract_strided_slice %7 {offsets = [0, 3, 0], sizes = [2, 1, 196], strides = [1, 1, 1]} : vector<2x16x196xf32> to vector<2x1x196xf32>
    %31 = vector.shape_cast %30 : vector<2x1x196xf32> to vector<2x196xf32>
    %32 = arith.truncf %31 : vector<2x196xf32> to vector<2x196xbf16>
    %c3 = arith.constant 3 : index
    %c0_16 = arith.constant 0 : index
    %c0_17 = arith.constant 0 : index
    %33 = vector.load %arg3[%c3, %c0_16, %c0_17] : memref<16x32x196xbf16, #tpu.memory_space<vmem>>, vector<1x32x196xbf16>
    %34 = vector.shape_cast %33 : vector<1x32x196xbf16> to vector<32x196xbf16>
    %cst_18 = arith.constant dense<0.000000e+00> : vector<2x32xf32>
    %35 = tpu.matmul %32, %34, %cst_18 {dimension_numbers = #tpu.dot_dimension_numbers<[1], [1], [0], [0], [0, 0, 1, 0], [], []>} : vector<2x196xbf16>, vector<32x196xbf16>, vector<2x32xf32> -> vector<2x32xf32>
    %36 = arith.addf %29, %35 : vector<2x32xf32>
    %37 = vector.extract_strided_slice %7 {offsets = [0, 4, 0], sizes = [2, 1, 196], strides = [1, 1, 1]} : vector<2x16x196xf32> to vector<2x1x196xf32>
    %38 = vector.shape_cast %37 : vector<2x1x196xf32> to vector<2x196xf32>
    %39 = arith.truncf %38 : vector<2x196xf32> to vector<2x196xbf16>
    %c4 = arith.constant 4 : index
    %c0_19 = arith.constant 0 : index
    %c0_20 = arith.constant 0 : index
    %40 = vector.load %arg3[%c4, %c0_19, %c0_20] : memref<16x32x196xbf16, #tpu.memory_space<vmem>>, vector<1x32x196xbf16>
    %41 = vector.shape_cast %40 : vector<1x32x196xbf16> to vector<32x196xbf16>
    %cst_21 = arith.constant dense<0.000000e+00> : vector<2x32xf32>
    %42 = tpu.matmul %39, %41, %cst_21 {dimension_numbers = #tpu.dot_dimension_numbers<[1], [1], [0], [0], [0, 0, 1, 0], [], []>} : vector<2x196xbf16>, vector<32x196xbf16>, vector<2x32xf32> -> vector<2x32xf32>
    %43 = arith.addf %36, %42 : vector<2x32xf32>
    %44 = vector.extract_strided_slice %7 {offsets = [0, 5, 0], sizes = [2, 1, 196], strides = [1, 1, 1]} : vector<2x16x196xf32> to vector<2x1x196xf32>
    %45 = vector.shape_cast %44 : vector<2x1x196xf32> to vector<2x196xf32>
    %46 = arith.truncf %45 : vector<2x196xf32> to vector<2x196xbf16>
    %c5 = arith.constant 5 : index
    %c0_22 = arith.constant 0 : index
    %c0_23 = arith.constant 0 : index
    %47 = vector.load %arg3[%c5, %c0_22, %c0_23] : memref<16x32x196xbf16, #tpu.memory_space<vmem>>, vector<1x32x196xbf16>
    %48 = vector.shape_cast %47 : vector<1x32x196xbf16> to vector<32x196xbf16>
    %cst_24 = arith.constant dense<0.000000e+00> : vector<2x32xf32>
    %49 = tpu.matmul %46, %48, %cst_24 {dimension_numbers = #tpu.dot_dimension_numbers<[1], [1], [0], [0], [0, 0, 1, 0], [], []>} : vector<2x196xbf16>, vector<32x196xbf16>, vector<2x32xf32> -> vector<2x32xf32>
    %50 = arith.addf %43, %49 : vector<2x32xf32>
    %51 = vector.extract_strided_slice %7 {offsets = [0, 6, 0], sizes = [2, 1, 196], strides = [1, 1, 1]} : vector<2x16x196xf32> to vector<2x1x196xf32>
    %52 = vector.shape_cast %51 : vector<2x1x196xf32> to vector<2x196xf32>
    %53 = arith.truncf %52 : vector<2x196xf32> to vector<2x196xbf16>
    %c6 = arith.constant 6 : index
    %c0_25 = arith.constant 0 : index
    %c0_26 = arith.constant 0 : index
    %54 = vector.load %arg3[%c6, %c0_25, %c0_26] : memref<16x32x196xbf16, #tpu.memory_space<vmem>>, vector<1x32x196xbf16>
    %55 = vector.shape_cast %54 : vector<1x32x196xbf16> to vector<32x196xbf16>
    %cst_27 = arith.constant dense<0.000000e+00> : vector<2x32xf32>
    %56 = tpu.matmul %53, %55, %cst_27 {dimension_numbers = #tpu.dot_dimension_numbers<[1], [1], [0], [0], [0, 0, 1, 0], [], []>} : vector<2x196xbf16>, vector<32x196xbf16>, vector<2x32xf32> -> vector<2x32xf32>
    %57 = arith.addf %50, %56 : vector<2x32xf32>
    %58 = vector.extract_strided_slice %7 {offsets = [0, 7, 0], sizes = [2, 1, 196], strides = [1, 1, 1]} : vector<2x16x196xf32> to vector<2x1x196xf32>
    %59 = vector.shape_cast %58 : vector<2x1x196xf32> to vector<2x196xf32>
    %60 = arith.truncf %59 : vector<2x196xf32> to vector<2x196xbf16>
    %c7 = arith.constant 7 : index
    %c0_28 = arith.constant 0 : index
    %c0_29 = arith.constant 0 : index
    %61 = vector.load %arg3[%c7, %c0_28, %c0_29] : memref<16x32x196xbf16, #tpu.memory_space<vmem>>, vector<1x32x196xbf16>
    %62 = vector.shape_cast %61 : vector<1x32x196xbf16> to vector<32x196xbf16>
    %cst_30 = arith.constant dense<0.000000e+00> : vector<2x32xf32>
    %63 = tpu.matmul %60, %62, %cst_30 {dimension_numbers = #tpu.dot_dimension_numbers<[1], [1], [0], [0], [0, 0, 1, 0], [], []>} : vector<2x196xbf16>, vector<32x196xbf16>, vector<2x32xf32> -> vector<2x32xf32>
    %64 = arith.addf %57, %63 : vector<2x32xf32>
    %65 = vector.extract_strided_slice %7 {offsets = [0, 8, 0], sizes = [2, 1, 196], strides = [1, 1, 1]} : vector<2x16x196xf32> to vector<2x1x196xf32>
    %66 = vector.shape_cast %65 : vector<2x1x196xf32> to vector<2x196xf32>
    %67 = arith.truncf %66 : vector<2x196xf32> to vector<2x196xbf16>
    %c8 = arith.constant 8 : index
    %c0_31 = arith.constant 0 : index
    %c0_32 = arith.constant 0 : index
    %68 = vector.load %arg3[%c8, %c0_31, %c0_32] : memref<16x32x196xbf16, #tpu.memory_space<vmem>>, vector<1x32x196xbf16>
    %69 = vector.shape_cast %68 : vector<1x32x196xbf16> to vector<32x196xbf16>
    %cst_33 = arith.constant dense<0.000000e+00> : vector<2x32xf32>
    %70 = tpu.matmul %67, %69, %cst_33 {dimension_numbers = #tpu.dot_dimension_numbers<[1], [1], [0], [0], [0, 0, 1, 0], [], []>} : vector<2x196xbf16>, vector<32x196xbf16>, vector<2x32xf32> -> vector<2x32xf32>
    %71 = arith.addf %64, %70 : vector<2x32xf32>
    %72 = vector.extract_strided_slice %7 {offsets = [0, 9, 0], sizes = [2, 1, 196], strides = [1, 1, 1]} : vector<2x16x196xf32> to vector<2x1x196xf32>
    %73 = vector.shape_cast %72 : vector<2x1x196xf32> to vector<2x196xf32>
    %74 = arith.truncf %73 : vector<2x196xf32> to vector<2x196xbf16>
    %c9 = arith.constant 9 : index
    %c0_34 = arith.constant 0 : index
    %c0_35 = arith.constant 0 : index
    %75 = vector.load %arg3[%c9, %c0_34, %c0_35] : memref<16x32x196xbf16, #tpu.memory_space<vmem>>, vector<1x32x196xbf16>
    %76 = vector.shape_cast %75 : vector<1x32x196xbf16> to vector<32x196xbf16>
    %cst_36 = arith.constant dense<0.000000e+00> : vector<2x32xf32>
    %77 = tpu.matmul %74, %76, %cst_36 {dimension_numbers = #tpu.dot_dimension_numbers<[1], [1], [0], [0], [0, 0, 1, 0], [], []>} : vector<2x196xbf16>, vector<32x196xbf16>, vector<2x32xf32> -> vector<2x32xf32>
    %78 = arith.addf %71, %77 : vector<2x32xf32>
    %79 = vector.extract_strided_slice %7 {offsets = [0, 10, 0], sizes = [2, 1, 196], strides = [1, 1, 1]} : vector<2x16x196xf32> to vector<2x1x196xf32>
    %80 = vector.shape_cast %79 : vector<2x1x196xf32> to vector<2x196xf32>
    %81 = arith.truncf %80 : vector<2x196xf32> to vector<2x196xbf16>
    %c10 = arith.constant 10 : index
    %c0_37 = arith.constant 0 : index
    %c0_38 = arith.constant 0 : index
    %82 = vector.load %arg3[%c10, %c0_37, %c0_38] : memref<16x32x196xbf16, #tpu.memory_space<vmem>>, vector<1x32x196xbf16>
    %83 = vector.shape_cast %82 : vector<1x32x196xbf16> to vector<32x196xbf16>
    %cst_39 = arith.constant dense<0.000000e+00> : vector<2x32xf32>
    %84 = tpu.matmul %81, %83, %cst_39 {dimension_numbers = #tpu.dot_dimension_numbers<[1], [1], [0], [0], [0, 0, 1, 0], [], []>} : vector<2x196xbf16>, vector<32x196xbf16>, vector<2x32xf32> -> vector<2x32xf32>
    %85 = arith.addf %78, %84 : vector<2x32xf32>
    %86 = vector.extract_strided_slice %7 {offsets = [0, 11, 0], sizes = [2, 1, 196], strides = [1, 1, 1]} : vector<2x16x196xf32> to vector<2x1x196xf32>
    %87 = vector.shape_cast %86 : vector<2x1x196xf32> to vector<2x196xf32>
    %88 = arith.truncf %87 : vector<2x196xf32> to vector<2x196xbf16>
    %c11 = arith.constant 11 : index
    %c0_40 = arith.constant 0 : index
    %c0_41 = arith.constant 0 : index
    %89 = vector.load %arg3[%c11, %c0_40, %c0_41] : memref<16x32x196xbf16, #tpu.memory_space<vmem>>, vector<1x32x196xbf16>
    %90 = vector.shape_cast %89 : vector<1x32x196xbf16> to vector<32x196xbf16>
    %cst_42 = arith.constant dense<0.000000e+00> : vector<2x32xf32>
    %91 = tpu.matmul %88, %90, %cst_42 {dimension_numbers = #tpu.dot_dimension_numbers<[1], [1], [0], [0], [0, 0, 1, 0], [], []>} : vector<2x196xbf16>, vector<32x196xbf16>, vector<2x32xf32> -> vector<2x32xf32>
    %92 = arith.addf %85, %91 : vector<2x32xf32>
    %93 = vector.extract_strided_slice %7 {offsets = [0, 12, 0], sizes = [2, 1, 196], strides = [1, 1, 1]} : vector<2x16x196xf32> to vector<2x1x196xf32>
    %94 = vector.shape_cast %93 : vector<2x1x196xf32> to vector<2x196xf32>
    %95 = arith.truncf %94 : vector<2x196xf32> to vector<2x196xbf16>
    %c12 = arith.constant 12 : index
    %c0_43 = arith.constant 0 : index
    %c0_44 = arith.constant 0 : index
    %96 = vector.load %arg3[%c12, %c0_43, %c0_44] : memref<16x32x196xbf16, #tpu.memory_space<vmem>>, vector<1x32x196xbf16>
    %97 = vector.shape_cast %96 : vector<1x32x196xbf16> to vector<32x196xbf16>
    %cst_45 = arith.constant dense<0.000000e+00> : vector<2x32xf32>
    %98 = tpu.matmul %95, %97, %cst_45 {dimension_numbers = #tpu.dot_dimension_numbers<[1], [1], [0], [0], [0, 0, 1, 0], [], []>} : vector<2x196xbf16>, vector<32x196xbf16>, vector<2x32xf32> -> vector<2x32xf32>
    %99 = arith.addf %92, %98 : vector<2x32xf32>
    %100 = vector.extract_strided_slice %7 {offsets = [0, 13, 0], sizes = [2, 1, 196], strides = [1, 1, 1]} : vector<2x16x196xf32> to vector<2x1x196xf32>
    %101 = vector.shape_cast %100 : vector<2x1x196xf32> to vector<2x196xf32>
    %102 = arith.truncf %101 : vector<2x196xf32> to vector<2x196xbf16>
    %c13 = arith.constant 13 : index
    %c0_46 = arith.constant 0 : index
    %c0_47 = arith.constant 0 : index
    %103 = vector.load %arg3[%c13, %c0_46, %c0_47] : memref<16x32x196xbf16, #tpu.memory_space<vmem>>, vector<1x32x196xbf16>
    %104 = vector.shape_cast %103 : vector<1x32x196xbf16> to vector<32x196xbf16>
    %cst_48 = arith.constant dense<0.000000e+00> : vector<2x32xf32>
    %105 = tpu.matmul %102, %104, %cst_48 {dimension_numbers = #tpu.dot_dimension_numbers<[1], [1], [0], [0], [0, 0, 1, 0], [], []>} : vector<2x196xbf16>, vector<32x196xbf16>, vector<2x32xf32> -> vector<2x32xf32>
    %106 = arith.addf %99, %105 : vector<2x32xf32>
    %107 = vector.extract_strided_slice %7 {offsets = [0, 14, 0], sizes = [2, 1, 196], strides = [1, 1, 1]} : vector<2x16x196xf32> to vector<2x1x196xf32>
    %108 = vector.shape_cast %107 : vector<2x1x196xf32> to vector<2x196xf32>
    %109 = arith.truncf %108 : vector<2x196xf32> to vector<2x196xbf16>
    %c14 = arith.constant 14 : index
    %c0_49 = arith.constant 0 : index
    %c0_50 = arith.constant 0 : index
    %110 = vector.load %arg3[%c14, %c0_49, %c0_50] : memref<16x32x196xbf16, #tpu.memory_space<vmem>>, vector<1x32x196xbf16>
    %111 = vector.shape_cast %110 : vector<1x32x196xbf16> to vector<32x196xbf16>
    %cst_51 = arith.constant dense<0.000000e+00> : vector<2x32xf32>
    %112 = tpu.matmul %109, %111, %cst_51 {dimension_numbers = #tpu.dot_dimension_numbers<[1], [1], [0], [0], [0, 0, 1, 0], [], []>} : vector<2x196xbf16>, vector<32x196xbf16>, vector<2x32xf32> -> vector<2x32xf32>
    %113 = arith.addf %106, %112 : vector<2x32xf32>
    %114 = vector.extract_strided_slice %7 {offsets = [0, 15, 0], sizes = [2, 1, 196], strides = [1, 1, 1]} : vector<2x16x196xf32> to vector<2x1x196xf32>
    %115 = vector.shape_cast %114 : vector<2x1x196xf32> to vector<2x196xf32>
    %116 = arith.truncf %115 : vector<2x196xf32> to vector<2x196xbf16>
    %c15 = arith.constant 15 : index
    %c0_52 = arith.constant 0 : index
    %c0_53 = arith.constant 0 : index
    %117 = vector.load %arg3[%c15, %c0_52, %c0_53] : memref<16x32x196xbf16, #tpu.memory_space<vmem>>, vector<1x32x196xbf16>
    %118 = vector.shape_cast %117 : vector<1x32x196xbf16> to vector<32x196xbf16>
    %cst_54 = arith.constant dense<0.000000e+00> : vector<2x32xf32>
    %119 = tpu.matmul %116, %118, %cst_54 {dimension_numbers = #tpu.dot_dimension_numbers<[1], [1], [0], [0], [0, 0, 1, 0], [], []>} : vector<2x196xbf16>, vector<32x196xbf16>, vector<2x32xf32> -> vector<2x32xf32>
    %120 = arith.addf %113, %119 : vector<2x32xf32>
    %c0_55 = arith.constant 0 : index
    %c0_56 = arith.constant 0 : index
    %121 = vector.load %arg6[%c0_55, %c0_56] : memref<8x384xf32, #tpu.memory_space<vmem>>, vector<1x32xf32>
    %122 = vector.broadcast %121 : vector<1x32xf32> to vector<2x32xf32>
    %123 = arith.addf %120, %122 : vector<2x32xf32>
    %cst_57 = arith.constant 0.000000e+00 : f32
    %124 = vector.broadcast %cst_57 : f32 to vector<2x32xf32>
    %125 = arith.maximumf %123, %124 : vector<2x32xf32>
    %c0_58 = arith.constant 0 : index
    %c0_59 = arith.constant 0 : index
    %126 = vector.load %arg4[%c0_58, %c0_59] : memref<32x32xf32, #tpu.memory_space<vmem>>, vector<32x32xf32>
    %cst_60 = arith.constant dense<0.000000e+00> : vector<2x32xf32>
    %127 = tpu.matmul %125, %126, %cst_60 {dimension_numbers = #tpu.dot_dimension_numbers<[1], [0], [0], [1], [0, 0, 1, 1], [], []>} : vector<2x32xf32>, vector<32x32xf32>, vector<2x32xf32> -> vector<2x32xf32>
    %c1_61 = arith.constant 1 : index
    %c0_62 = arith.constant 0 : index
    %128 = vector.load %arg6[%c1_61, %c0_62] : memref<8x384xf32, #tpu.memory_space<vmem>>, vector<1x32xf32>
    %129 = vector.broadcast %128 : vector<1x32xf32> to vector<2x32xf32>
    %130 = arith.addf %127, %129 : vector<2x32xf32>
    %cst_63 = arith.constant 0.000000e+00 : f32
    %131 = vector.broadcast %cst_63 : f32 to vector<2x32xf32>
    %132 = arith.maximumf %130, %131 : vector<2x32xf32>
    %c0_64 = arith.constant 0 : index
    %c0_65 = arith.constant 0 : index
    %133 = vector.load %arg7[%c0_64, %c0_65] : memref<2x33xf32, #tpu.memory_space<vmem>>, vector<2x32xf32>
    %c0_66 = arith.constant 0 : index
    %c32 = arith.constant 32 : index
    %134 = vector.load %arg7[%c0_66, %c32] : memref<2x33xf32, #tpu.memory_space<vmem>>, vector<2x1xf32>
    %135 = vector.broadcast %134 : vector<2x1xf32> to vector<2x32xf32>
    %136 = arith.mulf %133, %135 : vector<2x32xf32>
    %c0_67 = arith.constant 0 : index
    %c0_68 = arith.constant 0 : index
    %c0_69 = arith.constant 0 : index
    %137 = vector.load %arg5[%c0_67, %c0_68, %c0_69] : memref<2x32x384xf32, #tpu.memory_space<vmem>>, vector<1x32x384xf32>
    %138 = vector.shape_cast %137 : vector<1x32x384xf32> to vector<32x384xf32>
    %cst_70 = arith.constant dense<0.000000e+00> : vector<2x384xf32>
    %139 = tpu.matmul %132, %138, %cst_70 {dimension_numbers = #tpu.dot_dimension_numbers<[1], [0], [0], [1], [0, 0, 1, 1], [], []>} : vector<2x32xf32>, vector<32x384xf32>, vector<2x384xf32> -> vector<2x384xf32>
    %c2_71 = arith.constant 2 : index
    %c0_72 = arith.constant 0 : index
    %140 = vector.load %arg6[%c2_71, %c0_72] : memref<8x384xf32, #tpu.memory_space<vmem>>, vector<1x384xf32>
    %141 = vector.broadcast %140 : vector<1x384xf32> to vector<2x384xf32>
    %142 = arith.addf %139, %141 : vector<2x384xf32>
    %c1_73 = arith.constant 1 : index
    %c0_74 = arith.constant 0 : index
    %c0_75 = arith.constant 0 : index
    %143 = vector.load %arg5[%c1_73, %c0_74, %c0_75] : memref<2x32x384xf32, #tpu.memory_space<vmem>>, vector<1x32x384xf32>
    %144 = vector.shape_cast %143 : vector<1x32x384xf32> to vector<32x384xf32>
    %cst_76 = arith.constant dense<0.000000e+00> : vector<2x384xf32>
    %145 = tpu.matmul %136, %144, %cst_76 {dimension_numbers = #tpu.dot_dimension_numbers<[1], [0], [0], [1], [0, 0, 1, 1], [], []>} : vector<2x32xf32>, vector<32x384xf32>, vector<2x384xf32> -> vector<2x384xf32>
    %c3_77 = arith.constant 3 : index
    %c0_78 = arith.constant 0 : index
    %146 = vector.load %arg6[%c3_77, %c0_78] : memref<8x384xf32, #tpu.memory_space<vmem>>, vector<1x384xf32>
    %147 = vector.broadcast %146 : vector<1x384xf32> to vector<2x384xf32>
    %148 = arith.addf %145, %147 : vector<2x384xf32>
    %149 = arith.addf %142, %148 : vector<2x384xf32>
    %150 = vector.extract_strided_slice %149 {offsets = [0, 0], sizes = [2, 128], strides = [1, 1]} : vector<2x384xf32> to vector<2x128xf32>
    %151 = arith.negf %150 : vector<2x128xf32>
    %152 = math.exp %151 : vector<2x128xf32>
    %cst_79 = arith.constant 1.000000e+00 : f32
    %153 = vector.broadcast %cst_79 : f32 to vector<2x128xf32>
    %154 = arith.addf %153, %152 : vector<2x128xf32>
    %155 = arith.divf %153, %154 : vector<2x128xf32>
    %156 = vector.extract_strided_slice %149 {offsets = [0, 128], sizes = [2, 128], strides = [1, 1]} : vector<2x384xf32> to vector<2x128xf32>
    %157 = arith.negf %156 : vector<2x128xf32>
    %158 = math.exp %157 : vector<2x128xf32>
    %cst_80 = arith.constant 1.000000e+00 : f32
    %159 = vector.broadcast %cst_80 : f32 to vector<2x128xf32>
    %160 = arith.addf %159, %158 : vector<2x128xf32>
    %161 = arith.divf %159, %160 : vector<2x128xf32>
    %162 = vector.extract_strided_slice %161 {offsets = [0, 0], sizes = [2, 32], strides = [1, 1]} : vector<2x128xf32> to vector<2x32xf32>
    %163 = vector.extract_strided_slice %142 {offsets = [0, 256], sizes = [2, 128], strides = [1, 1]} : vector<2x384xf32> to vector<2x128xf32>
    %164 = vector.extract_strided_slice %148 {offsets = [0, 256], sizes = [2, 128], strides = [1, 1]} : vector<2x384xf32> to vector<2x128xf32>
    %165 = arith.mulf %155, %164 : vector<2x128xf32>
    %166 = arith.addf %163, %165 : vector<2x128xf32>
    %167 = math.tanh %166 : vector<2x128xf32>
    %168 = vector.extract_strided_slice %167 {offsets = [0, 0], sizes = [2, 32], strides = [1, 1]} : vector<2x128xf32> to vector<2x32xf32>
    %cst_81 = arith.constant 1.000000e+00 : f32
    %169 = vector.broadcast %cst_81 : f32 to vector<2x32xf32>
    %170 = arith.subf %169, %162 : vector<2x32xf32>
    %171 = arith.mulf %170, %168 : vector<2x32xf32>
    %172 = arith.mulf %162, %136 : vector<2x32xf32>
    %173 = arith.addf %171, %172 : vector<2x32xf32>
    %c0_82 = arith.constant 0 : index
    %c0_83 = arith.constant 0 : index
    %174 = vector.load %arg9[%c0_82, %c0_83] : memref<2x32xf32, #tpu.memory_space<vmem>>, vector<2x32xf32>
    tpu.vector_store %arg9[%c0_82, %c0_83], %173 {strides = array<i32>} : memref<2x32xf32, #tpu.memory_space<vmem>>, vector<2x32xf32>,
    %cst_84 = arith.constant dense<0.000000e+00> : vector<2xf32>
    %175 = vector.multi_reduction <add>, %173, %cst_84 [1] : vector<2x32xf32> to vector<2xf32>
    %176 = vector.shape_cast %175 : vector<2xf32> to vector<2x1xf32>
    %cst_85 = arith.constant 3.200000e+01 : f32
    %177 = vector.broadcast %cst_85 : f32 to vector<2x1xf32>
    %178 = arith.divf %176, %177 : vector<2x1xf32>
    %179 = vector.broadcast %178 : vector<2x1xf32> to vector<2x32xf32>
    %180 = arith.subf %173, %179 : vector<2x32xf32>
    %181 = arith.mulf %180, %180 : vector<2x32xf32>
    %cst_86 = arith.constant dense<0.000000e+00> : vector<2xf32>
    %182 = vector.multi_reduction <add>, %181, %cst_86 [1] : vector<2x32xf32> to vector<2xf32>
    %183 = vector.shape_cast %182 : vector<2xf32> to vector<2x1xf32>
    %cst_87 = arith.constant 3.200000e+01 : f32
    %184 = vector.broadcast %cst_87 : f32 to vector<2x1xf32>
    %185 = arith.divf %183, %184 : vector<2x1xf32>
    %186 = vector.broadcast %178 : vector<2x1xf32> to vector<2x32xf32>
    %187 = arith.subf %173, %186 : vector<2x32xf32>
    %cst_88 = arith.constant 9.99999974E-6 : f32
    %188 = vector.broadcast %cst_88 : f32 to vector<2x1xf32>
    %189 = arith.addf %185, %188 : vector<2x1xf32>
    %190 = math.rsqrt %189 : vector<2x1xf32>
    %191 = vector.broadcast %190 : vector<2x1xf32> to vector<2x32xf32>
    %192 = arith.mulf %187, %191 : vector<2x32xf32>
    %c4_89 = arith.constant 4 : index
    %c0_90 = arith.constant 0 : index
    %193 = vector.load %arg6[%c4_89, %c0_90] : memref<8x384xf32, #tpu.memory_space<vmem>>, vector<1x32xf32>
    %194 = vector.broadcast %193 : vector<1x32xf32> to vector<2x32xf32>
    %195 = arith.mulf %192, %194 : vector<2x32xf32>
    %c5_91 = arith.constant 5 : index
    %c0_92 = arith.constant 0 : index
    %196 = vector.load %arg6[%c5_91, %c0_92] : memref<8x384xf32, #tpu.memory_space<vmem>>, vector<1x32xf32>
    %197 = vector.broadcast %196 : vector<1x32xf32> to vector<2x32xf32>
    %198 = arith.addf %195, %197 : vector<2x32xf32>
    %c6_93 = arith.constant 6 : index
    %c0_94 = arith.constant 0 : index
    %199 = vector.load %arg6[%c6_93, %c0_94] : memref<8x384xf32, #tpu.memory_space<vmem>>, vector<1x32xf32>
    %200 = vector.broadcast %199 : vector<1x32xf32> to vector<2x32xf32>
    %201 = arith.mulf %198, %200 : vector<2x32xf32>
    %cst_95 = arith.constant dense<0.000000e+00> : vector<2xf32>
    %202 = vector.multi_reduction <add>, %201, %cst_95 [1] : vector<2x32xf32> to vector<2xf32>
    %203 = vector.shape_cast %202 : vector<2xf32> to vector<2x1xf32>
    %c7_96 = arith.constant 7 : index
    %c0_97 = arith.constant 0 : index
    %204 = vector.load %arg6[%c7_96, %c0_97] : memref<8x384xf32, #tpu.memory_space<vmem>>, vector<1x1xf32>
    %205 = vector.broadcast %204 : vector<1x1xf32> to vector<2x1xf32>
    %206 = arith.addf %203, %205 : vector<2x1xf32>
    %c0_98 = arith.constant 0 : index
    %c0_99 = arith.constant 0 : index
    %207 = vector.load %arg8[%c0_98, %c0_99] : memref<2x1xf32, #tpu.memory_space<vmem>>, vector<2x1xf32>
    tpu.vector_store %arg8[%c0_98, %c0_99], %206 {strides = array<i32>} : memref<2x1xf32, #tpu.memory_space<vmem>>, vector<2x1xf32>,
    return
  }
  func.func @transform_0(%arg0: i32) -> (i32, i32, i32) {
    %c0_i32 = arith.constant 0 : i32
    %c0_i32_0 = arith.constant 0 : i32
    %c0_i32_1 = arith.constant 0 : i32
    %c0_i32_2 = arith.constant 0 : i32
    return %c0_i32, %c0_i32_0, %c0_i32_1 : i32, i32, i32
  }
  func.func @transform_1(%arg0: i32) -> (i32, i32) {
    %c0_i32 = arith.constant 0 : i32
    %c0_i32_0 = arith.constant 0 : i32
    %c0_i32_1 = arith.constant 0 : i32
    return %c0_i32, %c0_i32_0 : i32, i32
  }
  func.func @transform_2(%arg0: i32) -> (i32, i32, i32) {
    %c0_i32 = arith.constant 0 : i32
    %c0_i32_0 = arith.constant 0 : i32
    %c0_i32_1 = arith.constant 0 : i32
    %c0_i32_2 = arith.constant 0 : i32
    return %c0_i32, %c0_i32_0, %c0_i32_1 : i32, i32, i32
  }
  func.func @transform_3(%arg0: i32) -> (i32, i32) {
    %c0_i32 = arith.constant 0 : i32
    %c0_i32_0 = arith.constant 0 : i32
    %c0_i32_1 = arith.constant 0 : i32
    return %c0_i32, %c0_i32_0 : i32, i32
  }
  func.func @transform_4(%arg0: i32) -> (i32, i32, i32) {
    %c0_i32 = arith.constant 0 : i32
    %c0_i32_0 = arith.constant 0 : i32
    %c0_i32_1 = arith.constant 0 : i32
    %c0_i32_2 = arith.constant 0 : i32
    return %c0_i32, %c0_i32_0, %c0_i32_1 : i32, i32, i32
  }
  func.func @transform_5(%arg0: i32) -> (i32, i32) {
    %c0_i32 = arith.constant 0 : i32
    %c0_i32_0 = arith.constant 0 : i32
    %c0_i32_1 = arith.constant 0 : i32
    return %c0_i32, %c0_i32_0 : i32, i32
  }
  func.func @transform_6(%arg0: i32) -> (i32, i32) {
    %c0_i32 = arith.constant 0 : i32
    %c0_i32_0 = arith.constant 0 : i32
    %c0_i32_1 = arith.constant 0 : i32
    return %c0_i32, %c0_i32_0 : i32, i32
  }
  func.func @transform_7(%arg0: i32) -> (i32, i32) {
    %c0_i32 = arith.constant 0 : i32
    %c0_i32_0 = arith.constant 0 : i32
    %c0_i32_1 = arith.constant 0 : i32
    return %c0_i32, %c0_i32_0 : i32, i32
  }
  func.func @transform_8(%arg0: i32) -> (i32, i32) {
    %c0_i32 = arith.constant 0 : i32
    %c0_i32_0 = arith.constant 0 : i32
    %c0_i32_1 = arith.constant 0 : i32
    return %c0_i32, %c0_i32_0 : i32, i32
  }
}

</mosaic_0001>

<bundles_post_ra>
// kernel: squeeze.100
= control target key start
LH: loop header
LB: loop body
LE: loop exit
PB: predicated region body
PF: predicated region fallthrough
CT: control target
= control target key end

     0   :  { %s89_s10 = smov 3  ;;  %s67_s11 = smov 3  ;;  %vm72_vm0 = vcmask 15360   ;;  %vm64_vm1 = vcmask 113664   ;;  %vm76_vm2 = vcmask 97280   ;;  %vm79_vm3 = vcmask 1048560   ;;  %s266_s0 = inlined_call_operand.vmem [shape: bf16[2,1,14,14], index: 0, kind: input, shape index: {}]   ;;  %s267_s1 = inlined_call_operand.vmem [shape: bf16[2,1,196], index: 1, kind: output, shape index: {}]  }
   0x1   :  { %v211_v0 = vld [vmem:[%s266_s0 + $0x8] sm:$0xff]   ;;  %v208_v1 = vld [vmem:[%s266_s0] sm:$0xff]   ;;  %s82_s0 = smov 3  ;;  %s70_s12 = smov 3  ;;  %vm86_vm4 = vcmask 1032064   ;;  %vm93_vm5 = vcmask 917264  }
   0x2   :  { %v206_v2 = vunpack.c.h.bf16 %v211_v0  ;;  %v210_v3 = vunpack.c.h.bf16 %v208_v1  ;;  %v205_v4 = vunpack.c.l.bf16 %v211_v0  ;;  %v209_v5 = vunpack.c.l.bf16 %v208_v1  ;;  %s103_s13 = smov 3  ;;  %s225_s14 = smov 112  }
   0x3   :  { %s226_s15 = smov 98   ;;  %s227_s16 = smov 70   ;;  %vm100_vm6 = vcmask 802464   ;;  %vm107_vm7 = vcmask 687664   ;;  %vm114_vm8 = vcmask 572864   ;;  %vm121_vm9 = vcmask 556464  }
   0x4   :  { %18 = vst [vmem:[#allocation1 + $0x18] sm:$0xff] %v206_v2  ;;  %s96_s17 = smov 3  ;;  %s110_s18 = smov 3  ;;  %vm136_vm10 = vcmask 441664   ;;  %vm129_vm11 = vcmask 458064   ;;  %vm144_vm12 = vcmask 343264  }
   0x5   :  { %48 = vst [vmem:[#allocation1 + $0x8] sm:$0xff] %v210_v3  ;;  %s228_s19 = smov 126   ;;  %s229_s20 = smov 84   ;;  %vm159_vm13 = vcmask 228464   ;;  %vm151_vm14 = vcmask 326864   ;;  %vm166_vm15 = vcmask 212064  }
   0x6   :  { %33 = vst [vmem:[#allocation1 + $0x10] sm:$0xff] %v205_v4  ;;  %s117_s21 = smov 3  ;;  %s230_s22 = smov 56  }
   0x7   :  { %61 = vst [vmem:[#allocation1] sm:$0xff] %v209_v5  ;;  %s125_s23 = smov 3  ;;  %s132_s24 = smov 3 }
   0x8   :  { %s231_s25 = smov 54   ;;  %s232_s26 = smov 42  }
   0x9   :  { %s140_s27 = smov 3  ;;  %s233_s28 = smov 40  }
   0xa   :  { %s147_s29 = smov 3  ;;  %s155_s30 = smov 3 }
   0xb   :  { %s234_s2 = smov 28   ;;  %s235_s3 = smov 26  }
   0xc   :  { %v83_v6 = vld [vmem:[#allocation1 + $0x8] ss:$16 sm:%s82_s0]   ;;  %v68_v8 = vld [vmem:[#allocation1 + $0x9] ss:$16 sm:%s67_s11]   ;;  %v118_v14 = vld [vmem:[#allocation1 + $0xd] ss:$16 sm:%s117_s21]  }
   0xd   :  { %84 = vrot.lane.b32.xlu0 %v83_v6, %s225_s14  ;;  %v71_v9 = vld [vmem:[#allocation1 + $0x9] ss:$16 sm:%s70_s12]   ;;  %v133_v16 = vld [vmem:[#allocation1 + $0xc] ss:$16 sm:%s132_s24]   ;;  %v148_v18 = vld [vmem:[#allocation1 + $0xb] ss:$16 sm:%s147_s29]  }
   0xe   :  { %v90_v7 = vld [vmem:[#allocation1 + $0x7] ss:$16 sm:%s89_s10]   ;;  %v104_v10 = vld [vmem:[#allocation1 + $0x5] ss:$16 sm:%s103_s13]   ;;  %v73_v11 = vsel %vm72_vm0, %v71_v9, %v68_v8  ;;  %v97_v12 = vld [vmem:[#allocation1 + $0x6] ss:$16 sm:%s96_s17]  }
   0xf   :  { %91 = vrot.lane.b32.xlu1 %v90_v7, %s226_s15  ;;  %105 = vrot.lane.b32.xlu2 %v104_v10, %s227_s16  ;;  %v111_v13 = vld [vmem:[#allocation1 + $0x4] ss:$16 sm:%s110_s18]   ;;  %v126_v15 = vld [vmem:[#allocation1 + $0x3] ss:$16 sm:%s125_s23]   ;;  %s162_s4 = smov 3  ;;  %s236_s5 = smov 14  }
  0x10   :  { %v141_v17 = vld [vmem:[#allocation1 + $0x2] ss:$16 sm:%s140_s27]   ;;  %v156_v19 = vld [vmem:[#allocation1 + $0x1] ss:$16 sm:%s155_s30]   ;;  %v163_v20 = vld [vmem:[#allocation1 + $0xa] ss:$16 sm:%s162_s4]  }
  0x11   :  { %s237_s6 = smov 12   ;;  %s62_s7 = smov 3 }
  0x12   :  { %v63_v21 = vld [vmem:[#allocation1] ss:$16 sm:%s62_s7]  }
  0x13   :  { %65 = vst.msk [vmem:[#allocation0] ss:$16 sm:$0x3] %vm64_vm1, %v63_v21  }
  0x15   :  { %74 = vrot.lane.b32.xlu0 %v73_v11, %s228_s19 }
  0x17   :  { %98 = vrot.lane.b32.xlu1 %v97_v12, %s229_s20  ;;  %112 = vrot.lane.b32.xlu2 %v111_v13, %s230_s22 }
  0x1d   :  { %119 = vrot.lane.b32.xlu0 %v118_v14, %s231_s25 }
  0x1f   :  { %127 = vrot.lane.b32.xlu1 %v126_v15, %s232_s26  ;;  %134 = vrot.lane.b32.xlu2 %v133_v16, %s233_s28 }
  0x25   :  { %142 = vrot.lane.b32.xlu0 %v141_v17, %s234_s2 }
  0x27   :  { %149 = vrot.lane.b32.xlu1 %v148_v18, %s235_s3  ;;  %157 = vrot.lane.b32.xlu2 %v156_v19, %s236_s5 }
  0x2d   :  { %164 = vrot.lane.b32.xlu0 %v163_v20, %s237_s6 }
  0x69   :  { %v106_v22 = vpop.permute.xlu2 %105  }
  0x71   :  { %v113_v23 = vpop.permute.xlu2 %112  }
  0x79   :  { %v135_v24 = vpop.permute.xlu2 %134  }
  0x7f   :  { %v85_v25 = vpop.permute.xlu0 %84  }
  0x81   :  { %v92_v26 = vpop.permute.xlu1 %91   ;;  %v158_v27 = vpop.permute.xlu2 %157  }
  0x87   :  { %v75_v28 = vpop.permute.xlu0 %74  }
  0x88   :  { %78 = vst.msk [vmem:[#allocation0 + $0x8] ss:$16 sm:$0x3] %vm76_vm2, %v75_v28  }
  0x89   :  { %80 = vst.msk [vmem:[#allocation0] ss:$16 sm:$0x3] %vm79_vm3, %v75_v28   ;;  %v99_v29 = vpop.permute.xlu1 %98  }
  0x8a   :  { %87 = vst.msk [vmem:[#allocation0] ss:$16 sm:$0x3] %vm86_vm4, %v85_v25  }
  0x8b   :  { %94 = vst.msk [vmem:[#allocation0] ss:$16 sm:$0x3] %vm93_vm5, %v92_v26  }
  0x8c   :  { %101 = vst.msk [vmem:[#allocation0] ss:$16 sm:$0x3] %vm100_vm6, %v99_v29  }
  0x8d   :  { %108 = vst.msk [vmem:[#allocation0] ss:$16 sm:$0x3] %vm107_vm7, %v106_v22  }
  0x8e   :  { %115 = vst.msk [vmem:[#allocation0] ss:$16 sm:$0x3] %vm114_vm8, %v113_v23  }
  0x8f   :  { %v120_v30 = vpop.permute.xlu0 %119  }
  0x90   :  { %123 = vst.msk [vmem:[#allocation0 + $0x8] ss:$16 sm:$0x3] %vm121_vm9, %v120_v30  }
  0x91   :  { %v128_v31 = vpop.permute.xlu1 %127   ;;  %138 = vst.msk [vmem:[#allocation0 + $0x8] ss:$16 sm:$0x3] %vm136_vm10, %v135_v24  }
  0x92   :  { %130 = vst.msk [vmem:[#allocation0] ss:$16 sm:$0x3] %vm129_vm11, %v128_v31  }
  0x97   :  { %v143_v32 = vpop.permute.xlu0 %142  }
  0x98   :  { %145 = vst.msk [vmem:[#allocation0] ss:$16 sm:$0x3] %vm144_vm12, %v143_v32  }
  0x99   :  { %v150_v33 = vpop.permute.xlu1 %149   ;;  %160 = vst.msk [vmem:[#allocation0] ss:$16 sm:$0x3] %vm159_vm13, %v158_v27  }
  0x9a   :  { %153 = vst.msk [vmem:[#allocation0 + $0x8] ss:$16 sm:$0x3] %vm151_vm14, %v150_v33  }
  0x9f   :  { %v165_v34 = vpop.permute.xlu0 %164  }
  0xa0   :  { %168 = vst.msk [vmem:[#allocation0 + $0x8] ss:$16 sm:$0x3] %vm166_vm15, %v165_v34   ;;  %v171_v35 = vld [vmem:[#allocation0] sm:$0x3] }
  0xa1   :  { %v172_v36 = vpack.c.bf16 0.0, %v171_v35  ;;  %v184_v37 = vld [vmem:[#allocation0 + $0x10] sm:$0x3] }
  0xa2   :  { %v185_v38 = vpack.c.bf16 0.0, %v184_v37 }
  0xa3   :  { %175 = vst [vmem:[%s267_s1] sm:$0x1] %v172_v36 }
  0xa4   :  { %201 = vst [vmem:[%s267_s1 + $0x2] sm:$0x1] %v185_v38 }
  0xa7   :  { %v177_v39 = vld [vmem:[#allocation0 + $0x8] sm:$0x3]  ;;  %v191_v40 = vld [vmem:[#allocation0 + $0x18] sm:$0x3] }
  0xa8   :  { %v178_v41 = vpack.c.bf16 0.0, %v177_v39  ;;  %v192_v42 = vpack.c.bf16 0.0, %v191_v40 }
  0xaa   :  { %200 = vst [vmem:[%s267_s1 + $0x1] sm:$0x1] %v178_v41 }
  0xab   :  { %202 = vst [vmem:[%s267_s1 + $0x3] sm:$0x1] %v192_v42 }

// kernel: r_critic_forward.1
= control target key start
LH: loop header
LB: loop body
LE: loop exit
PB: predicated region body
PF: predicated region fallthrough
CT: control target
= control target key end

     0   :  { %vm76_vm0 = vcmask 1041408   ;;  %vm77_vm1 = vcmask 1042432   ;;  %v2117_v2 = vmov 65535   ;;  %s2905_s0 = inlined_call_operand.vmem [shape: bf16[2,37,196], index: 0, kind: input, shape index: {}]   ;;  %s2906_s1 = inlined_call_operand.vmem [shape: bf16[16,37], index: 1, kind: input, shape index: {}]   ;;  %s2907_s2 = inlined_call_operand.vmem [shape: bf16[16,32,196], index: 2, kind: input, shape index: {}]   ;;  %s2908_s3 = inlined_call_operand.vmem [shape: f32[32,32], index: 3, kind: input, shape index: {}]   ;;  %s2909_s4 = inlined_call_operand.vmem [shape: f32[2,32,384], index: 4, kind: input, shape index: {}]   ;;  %s2910_s5 = inlined_call_operand.vmem [shape: f32[8,384], index: 5, kind: input, shape index: {}]   ;;  %s2911_s6 = inlined_call_operand.vmem [shape: f32[2,33], index: 6, kind: input, shape index: {}]   ;;  %s2912_s7 = inlined_call_operand.vmem [shape: f32[2,1], index: 7, kind: output, shape index: {0}]   ;;  %s2913_s8 = inlined_call_operand.hbm [shape: f32[2,32], index: 8, kind: output, shape index: {1}]  }
   0x1   :  { %v36_v0 = vld [vmem:[%s2905_s0 + $0x20] sm:$0x77]  ;;  %v78_v3 = vsel %vm76_vm0, 4294967295, %v2117_v2  ;;  %v41_v5 = vld [vmem:[%s2905_s0 + $0x48] sm:$0x77] }
   0x2   :  { %v60_v1 = vunpack.c.l.b16 %v36_v0  ;;  %v61_v4 = vunpack.c.h.b16 %v36_v0  ;;  %v79_v6 = vsel %vm77_vm1, %v78_v3, 0  ;;  %v127_v7 = vunpack.c.l.b16 %v41_v5  ;;  %v1618_v11 = vld [vmem:[%s2905_s0 + $0x10] sm:$0xf]  ;;  %v2003_v12 = vld [vmem:[%s2905_s0 + $0x14] sm:$0xf0] }
   0x3   :  { %v128_v8 = vunpack.c.h.b16 %v41_v5  ;;  %v2002_v15 = vld [vmem:[%s2905_s0 + $0x14] sm:$0xf]  ;;  %v1620_v16 = vld [vmem:[%s2905_s0 + $0x18] sm:$0xf0]  ;;  %v1636_v17 = vld [vmem:[%s2905_s0 + $0x38] sm:$0xf]  ;;  %v1619_v25 = vor.u32 %v2003_v12, %v1618_v11 }
   0x4   :  { %v66_v9 = vpack.c.b16 %v60_v1, %v60_v1  ;;  %v67_v10 = vpack.c.b16 %v61_v4, %v61_v4  ;;  %v133_v13 = vpack.c.b16 %v127_v7, %v127_v7  ;;  %v2007_v20 = vld [vmem:[%s2905_s0 + $0x3c] sm:$0xf0]  ;;  %v2006_v21 = vld [vmem:[%s2905_s0 + $0x3c] sm:$0xf]  ;;  %v1638_v22 = vld [vmem:[%s2905_s0 + $0x40] sm:$0xf0]  ;;  %v1623_v26 = vor.u32 %v2002_v15, %v1620_v16 }
   0x5   :  { %v134_v14 = vpack.c.b16 %v128_v8, %v128_v8  ;;  %v1610_v27 = vld [vmem:[%s2905_s0] sm:$0xf]  ;;  %v2001_v28 = vld [vmem:[%s2905_s0 + $0x4] sm:$0xf0] }
   0x6   :  { %v81_v18 = vand.u32 %v79_v6, %v66_v9  ;;  %v84_v19 = vand.u32 %v79_v6, %v67_v10  ;;  %v140_v23 = vand.u32 %v133_v13, %v79_v6 }
   0x7   :  { %v143_v24 = vand.u32 %v134_v14, %v79_v6 }
   0x8   :  { %91 = vmatpush.bf16.msra.mxu0 %v81_v18  ;;  %105 = vmatpush.bf16.msra.mxu1 %v84_v19 }
   0x9   :  { %14 = vsyncpa [#allocation3], 0  ;;  %150 = vmatpush.bf16.msra.mxu2 %v140_v23  ;;  %164 = vmatpush.bf16.msra.mxu3 %v143_v24  ;;  %v1637_v29 = vor.u32 %v2007_v20, %v1636_v17  ;;  %v1641_v30 = vor.u32 %v2006_v21, %v1638_v22  ;;  %v2000_v31 = vld [vmem:[%s2905_s0 + $0x4] sm:$0xf]  ;;  %v1612_v32 = vld [vmem:[%s2905_s0 + $0x8] sm:$0xf0]  ;;  %v1611_v37 = vor.u32 %v2001_v28, %v1610_v27 }
   0xa   :  { %v1628_v33 = vld [vmem:[%s2905_s0 + $0x28] sm:$0xf]  ;;  %v2005_v34 = vld [vmem:[%s2905_s0 + $0x2c] sm:$0xf0]  ;;  %v2004_v35 = vld [vmem:[%s2905_s0 + $0x2c] sm:$0xf]  ;;  %v1615_v38 = vor.u32 %v2000_v31, %v1612_v32 }
   0xb   :  { %v1630_v36 = vld [vmem:[%s2905_s0 + $0x30] sm:$0xf0]  ;;  %v1629_v39 = vor.u32 %v2005_v34, %v1628_v33  ;;  %v1999_v41 = vld [vmem:[%s2906_s1] sm:$0xff]  ;;  %vm72_vm2 = vcmask 302080   ;;  %v1660_v43 = vld [vmem:[%s2907_s2 + $0x38] sm:$0xf0] }
   0xc   :  { %92 = vmatpush.bf16.msra.mxu0 %v1619_v25  ;;  %106 = vmatpush.bf16.msra.mxu1 %v1623_v26  ;;  %v1633_v40 = vor.u32 %v2004_v35, %v1630_v36  ;;  %v2014_v42 = vld [vmem:[%s2907_s2 + $0x34] sm:$0xf]  ;;  %v1658_v44 = vld [vmem:[%s2907_s2 + $0x30] sm:$0xf]  ;;  %v2015_v45 = vld [vmem:[%s2907_s2 + $0x34] sm:$0xf0] }
   0xd   :  { %151 = vmatpush.bf16.msra.mxu2 %v1637_v29  ;;  %165 = vmatpush.bf16.msra.mxu3 %v1641_v30  ;;  %v1663_v46 = vor.u32 %v2014_v42, %v1660_v43  ;;  %v1659_v47 = vor.u32 %v2015_v45, %v1658_v44  ;;  %vm228_vm3 = vcmask 556032   ;;  %v2010_v48 = vld [vmem:[%s2907_s2 + $0x14] sm:$0xf]  ;;  %v1677_v49 = vld [vmem:[%s2907_s2 + $0x18] sm:$0xf0]  ;;  %vm203_vm4 = vcmask 1041409  }
   0xe   :  { %v1675_v51 = vld [vmem:[%s2907_s2 + $0x10] sm:$0xf]  ;;  %v2011_v52 = vld [vmem:[%s2907_s2 + $0x14] sm:$0xf0]  ;;  %v1680_v53 = vor.u32 %v2010_v48, %v1677_v49  ;;  %v2012_v56 = vld [vmem:[%s2907_s2 + $0x24] sm:$0xf] }
   0xf   :  { %v236_v50 = vsel %vm228_vm3, %v1663_v46, 0  ;;  %v1676_v54 = vor.u32 %v2011_v52, %v1675_v51  ;;  %v1652_v57 = vld [vmem:[%s2907_s2 + $0x28] sm:$0xf0]  ;;  %v1650_v58 = vld [vmem:[%s2907_s2 + $0x20] sm:$0xf]  ;;  %vm1292_vm5 = vcmask 261120  }
  0x10   :  { %93 = vmatpush.bf16.msra.mxu0 %v1611_v37  ;;  %107 = vmatpush.bf16.msra.mxu1 %v1615_v38  ;;  %v296_v55 = vsel %vm228_vm3, %v1680_v53, 0  ;;  %v2013_v59 = vld [vmem:[%s2907_s2 + $0x24] sm:$0xf0]  ;;  %v1655_v60 = vor.u32 %v2012_v56, %v1652_v57  ;;  %v2008_v62 = vld [vmem:[%s2907_s2 + $0x4] sm:$0xf]  ;;  %vm1540_vm14 = vcmask 254976  }
  0x11   :  { %152 = vmatpush.bf16.msra.mxu2 %v1629_v39  ;;  %166 = vmatpush.bf16.msra.mxu3 %v1633_v40  ;;  %v1651_v61 = vor.u32 %v2013_v59, %v1650_v58  ;;  %v1669_v63 = vld [vmem:[%s2907_s2 + $0x8] sm:$0xf0]  ;;  %v1667_v1 = vld [vmem:[%s2907_s2] sm:$0xf]  ;;  %v2009_v2 = vld [vmem:[%s2907_s2 + $0x4] sm:$0xf0] }
  0x12   :  { %v233_v0 = vsel %vm228_vm3, %v1655_v60, 0  ;;  %v1672_v3 = vor.u32 %v2008_v62, %v1669_v63  ;;  %v1668_v4 = vor.u32 %v2009_v2, %v1667_v1  ;;  %v2018_v6 = vld [vmem:[%s2907_s2 + $0x54] sm:$0xf]  ;;  %v1698_v7 = vld [vmem:[%s2907_s2 + $0x58] sm:$0xf0]  ;;  %s1593_s25 = sshll.u32 %s2913_s8, 4  ;;  %s1594_s25 = int_to_ptr.hbm [resolvable:$true] %s1593_s25 }
  0x13   :  { %1624 = vmatmul.msk.bf16.vlgmr.msra.gmra.mxu0 %vm72_vm2, %v1999_v41  ;;  %1625 = vmatmul.msk.bf16.vlgmr.msra.gmra.mxu1 %vm72_vm2, %v1999_v41  ;;  %v1696_v8 = vld [vmem:[%s2907_s2 + $0x50] sm:$0xf]  ;;  %v2019_v9 = vld [vmem:[%s2907_s2 + $0x54] sm:$0xf0]  ;;  %v1701_v10 = vor.u32 %v2018_v6, %v1698_v7  ;;  %v2022_v12 = vld [vmem:[%s2907_s2 + $0x74] sm:$0xf] }
  0x14   :  { %1642 = vmatmul.msk.bf16.vlgmr.msra.gmra.mxu2 %vm72_vm2, %v1999_v41  ;;  %1643 = vmatmul.msk.bf16.vlgmr.msra.gmra.mxu3 %vm72_vm2, %v1999_v41  ;;  %v293_v5 = vsel %vm228_vm3, %v1672_v3, 0  ;;  %v1697_v11 = vor.u32 %v2019_v9, %v1696_v8  ;;  %v1719_v13 = vld [vmem:[%s2907_s2 + $0x78] sm:$0xf0]  ;;  %v1717_v15 = vld [vmem:[%s2907_s2 + $0x70] sm:$0xf]  ;;  %s2120_s1 = smov [#allocation2]  }
  0x15   :  { %244 = vmatpush.bf16.xpose.msrb.mxu0 %v1659_v47  ;;  %257 = vmatpush.bf16.xpose.msrb.mxu1 %v236_v50  ;;  %v363_v14 = vsel %vm228_vm3, %v1701_v10, 0  ;;  %v2023_v16 = vld [vmem:[%s2907_s2 + $0x74] sm:$0xf0]  ;;  %v1722_v17 = vor.u32 %v2022_v12, %v1719_v13  ;;  %v1688_v20 = vld [vmem:[%s2907_s2 + $0x40] sm:$0xf]  ;;  %s1591_s26 = sshll.u32 %s2120_s1, 4  ;;  %s1592_s26 = int_to_ptr.vmem [resolvable:$true] %s1591_s26 }
  0x16   :  { %304 = vmatpush.bf16.xpose.msrb.mxu2 %v1676_v54  ;;  %317 = vmatpush.bf16.xpose.msrb.mxu3 %v296_v55  ;;  %v1718_v18 = vor.u32 %v2023_v16, %v1717_v15  ;;  %v2017_v21 = vld [vmem:[%s2907_s2 + $0x44] sm:$0xf0]  ;;  %v2016_v22 = vld [vmem:[%s2907_s2 + $0x44] sm:$0xf]  ;;  %v1690_v23 = vld [vmem:[%s2907_s2 + $0x48] sm:$0xf0] }
  0x17   :  { %v431_v19 = vsel %vm228_vm3, %v1722_v17, 0  ;;  %v1709_v24 = vld [vmem:[%s2907_s2 + $0x60] sm:$0xf]  ;;  %v2021_v25 = vld [vmem:[%s2907_s2 + $0x64] sm:$0xf0]  ;;  %v1689_v26 = vor.u32 %v2017_v21, %v1688_v20  ;;  %v1693_v27 = vor.u32 %v2016_v22, %v1690_v23 }
  0x18   :  { %v2020_v28 = vld [vmem:[%s2907_s2 + $0x64] sm:$0xf]  ;;  %v1711_v29 = vld [vmem:[%s2907_s2 + $0x68] sm:$0xf0]  ;;  %v1710_v32 = vor.u32 %v2021_v25, %v1709_v24  ;;  %v2026_v46 = vld [vmem:[%s2907_s2 + $0x94] sm:$0xf] }
  0x19   :  { %v1714_v30 = vor.u32 %v2020_v28, %v1711_v29  ;;  %v360_v31 = vsel %vm228_vm3, %v1693_v27, 0  ;;  %v1738_v47 = vld [vmem:[%s2907_s2 + $0x90] sm:$0xf]  ;;  %v2027_v48 = vld [vmem:[%s2907_s2 + $0x94] sm:$0xf0] }
  0x1a   :  { %v1740_v49 = vld [vmem:[%s2907_s2 + $0x98] sm:$0xf0]  ;;  %v2030_v54 = vld [vmem:[%s2907_s2 + $0xb4] sm:$0xf]  ;;  %v1739_v58 = vor.u32 %v2027_v48, %v1738_v47  ;;  %v1759_v60 = vld [vmem:[%s2907_s2 + $0xb0] sm:$0xf] }
  0x1b   :  { %v428_v33 = vsel %vm228_vm3, %v1714_v30, 0  ;;  %v1761_v55 = vld [vmem:[%s2907_s2 + $0xb8] sm:$0xf0]  ;;  %v1743_v59 = vor.u32 %v2026_v46, %v1740_v49  ;;  %v1732_v12 = vld [vmem:[%s2907_s2 + $0x88] sm:$0xf0] }
  0x1c   :  { %v1764_v62 = vor.u32 %v2030_v54, %v1761_v55  ;;  %v1753_v15 = vld [vmem:[%s2907_s2 + $0xa8] sm:$0xf0]  ;;  %v1730_v16 = vld [vmem:[%s2907_s2 + $0x80] sm:$0xf]  ;;  %v2025_v17 = vld [vmem:[%s2907_s2 + $0x84] sm:$0xf0] }
  0x1d   :  { %245 = vmatpush.bf16.xpose.msrb.mxu0 %v1651_v61  ;;  %258 = vmatpush.bf16.xpose.msrb.mxu1 %v233_v0  ;;  %v2031_v61 = vld [vmem:[%s2907_s2 + $0xb4] sm:$0xf0]  ;;  %v499_v10 = vsel %vm228_vm3, %v1743_v59, 0  ;;  %v2029_v20 = vld [vmem:[%s2907_s2 + $0xa4] sm:$0xf0]  ;;  %v1731_v22 = vor.u32 %v2025_v17, %v1730_v16 }
  0x1e   :  { %305 = vmatpush.bf16.xpose.msrb.mxu2 %v1668_v4  ;;  %318 = vmatpush.bf16.xpose.msrb.mxu3 %v293_v5  ;;  %v1760_v7 = vor.u32 %v2031_v61, %v1759_v60  ;;  %v567_v13 = vsel %vm228_vm3, %v1764_v62, 0  ;;  %v2034_v28 = vld [vmem:[%s2907_s2 + $0xd4] sm:$0xf]  ;;  %v1782_v29 = vld [vmem:[%s2907_s2 + $0xd8] sm:$0xf0] }
  0x1f   :  { %v2039_v46 = vld [vmem:[%s2907_s2 + $0xf4] sm:$0xf0]  ;;  %v2032_v55 = vld [vmem:[%s2907_s2 + $0xc4] sm:$0xf] }
  0x20   :  { %v2036_v62 = vld [vmem:[%s2907_s2 + $0xe4] sm:$0xf] }
  0x25   :  { %371 = vmatpush.bf16.xpose.msra.mxu0 %v1697_v11  ;;  %384 = vmatpush.bf16.xpose.msra.mxu1 %v363_v14  ;;  %v2024_v11 = vld [vmem:[%s2907_s2 + $0x84] sm:$0xf] }
  0x26   :  { %439 = vmatpush.bf16.xpose.msra.mxu2 %v1718_v18  ;;  %452 = vmatpush.bf16.xpose.msra.mxu3 %v431_v19  ;;  %v2028_v14 = vld [vmem:[%s2907_s2 + $0xa4] sm:$0xf]  ;;  %v1735_v18 = vor.u32 %v2024_v11, %v1732_v12  ;;  %v1751_v19 = vld [vmem:[%s2907_s2 + $0xa0] sm:$0xf] }
  0x27   :  { %v1756_v21 = vor.u32 %v2028_v14, %v1753_v15  ;;  %v1752_v27 = vor.u32 %v2029_v20, %v1751_v19  ;;  %v1824_v14 = vld [vmem:[%s2907_s2 + $0x118] sm:$0xf0]  ;;  %v2046_v20 = vld [vmem:[%s2907_s2 + $0x134] sm:$0xf] }
  0x2d   :  { %372 = vmatpush.bf16.xpose.msra.mxu0 %v1689_v26  ;;  %385 = vmatpush.bf16.xpose.msra.mxu1 %v360_v31 }
  0x2e   :  { %440 = vmatpush.bf16.xpose.msra.mxu2 %v1710_v32  ;;  %453 = vmatpush.bf16.xpose.msra.mxu3 %v428_v33  ;;  %v496_v32 = vsel %vm228_vm3, %v1735_v18, 0  ;;  %v564_v33 = vsel %vm228_vm3, %v1756_v21, 0  ;;  %v1845_v21 = vld [vmem:[%s2907_s2 + $0x138] sm:$0xf0] }
  0x90   :  { %v95_v34 = vpop.f32.mrf.mxu0  ;;  %v109_v35 = vpop.f32.mrf.mxu1 }
  0x91   :  { %v173_v36 = vmax.f32 %v95_v34, 0.0  ;;  %v174_v37 = vmax.f32 %v109_v35, 0.0 }
  0x93   :  { %v181_v38 = vpack.c.bf16 %v173_v36, %v173_v36  ;;  %v182_v39 = vpack.c.bf16 %v174_v37, %v174_v37  ;;  %v2038_v36 = vld [vmem:[%s2907_s2 + $0xf4] sm:$0xf]  ;;  %v1803_v37 = vld [vmem:[%s2907_s2 + $0xf8] sm:$0xf0] }
  0x94   :  { %v1806_v47 = vor.u32 %v2038_v36, %v1803_v37  ;;  %v2040_v37 = vld [vmem:[%s2907_s2 + $0x104] sm:$0xf] }
  0x95   :  { %v2327_v40 = vunpack.c.l.b16 %v181_v38  ;;  %v2329_v41 = vunpack.c.l.b16 %v182_v39  ;;  %v1780_v38 = vld [vmem:[%s2907_s2 + $0xd0] sm:$0xf]  ;;  %v2035_v39 = vld [vmem:[%s2907_s2 + $0xd4] sm:$0xf0] }
  0x96   :  { %v703_v61 = vsel %vm228_vm3, %v1806_v47, 0  ;;  %v2041_v47 = vld [vmem:[%s2907_s2 + $0x104] sm:$0xf0] }
  0x97   :  { %v154_v42 = vpop.f32.mrf.mxu2  ;;  %v168_v43 = vpop.f32.mrf.mxu3  ;;  %v202_v52 = vrot.slane %v2327_v40, 1  ;;  %v205_v53 = vrot.slane %v2329_v41, 1  ;;  %v329_v23 = vrot.slane %v2327_v40, 2  ;;  %v332_v24 = vrot.slane %v2329_v41, 2 }
  0x98   :  { %v177_v44 = vmax.f32 %v154_v42, 0.0  ;;  %v178_v45 = vmax.f32 %v168_v43, 0.0  ;;  %v397_v30 = vrot.slane %v2327_v40, 3  ;;  %v400_v31 = vrot.slane %v2329_v41, 3 }
  0x99   :  { %v1785_v42 = vor.u32 %v2034_v28, %v1782_v29  ;;  %v533_v15 = vrot.slane %v2327_v40, 5  ;;  %v536_v16 = vrot.slane %v2329_v41, 5  ;;  %v2047_v28 = vld [vmem:[%s2907_s2 + $0x134] sm:$0xf0]  ;;  %v1848_v29 = vor.u32 %v2046_v20, %v1845_v21 }
  0x9a   :  { %v183_v50 = vpack.c.bf16 %v177_v44, %v177_v44  ;;  %v184_v51 = vpack.c.bf16 %v178_v45, %v178_v45  ;;  %v1801_v45 = vld [vmem:[%s2907_s2 + $0xf0] sm:$0xf] }
  0x9b   :  { %v1802_v54 = vor.u32 %v2039_v46, %v1801_v45  ;;  %v1837_v45 = vld [vmem:[%s2907_s2 + $0x128] sm:$0xf0]  ;;  %v1814_v46 = vld [vmem:[%s2907_s2 + $0x100] sm:$0xf] }
  0x9c   :  { %v2351_v56 = vunpack.c.l.b16 %v183_v50  ;;  %v2353_v57 = vunpack.c.l.b16 %v184_v51  ;;  %v1781_v50 = vor.u32 %v2035_v39, %v1780_v38  ;;  %v1816_v38 = vld [vmem:[%s2907_s2 + $0x108] sm:$0xf0] }
  0x9e   :  { %v204_v63 = vsel %vm203_vm4, %v2351_v56, %v202_v52  ;;  %v206_v0 = vsel %vm203_vm4, %v2353_v57, %v205_v53  ;;  %v264_v1 = vrot.slane %v2351_v56, 7  ;;  %v266_v2 = vrot.slane %v2353_v57, 7 }
  0x9f   :  { %v207_v3 = vpack.c.b16 %v204_v63, %v204_v63  ;;  %v208_v4 = vpack.c.b16 %v206_v0, %v206_v0  ;;  %v330_v25 = vrot.slane %v2351_v56, 1  ;;  %v333_v26 = vrot.slane %v2353_v57, 1  ;;  %v1795_v63 = vld [vmem:[%s2907_s2 + $0xe8] sm:$0xf0]  ;;  %v1772_v0 = vld [vmem:[%s2907_s2 + $0xc0] sm:$0xf] }
  0xa0   :  { %v265_v5 = vsel %vm203_vm4, %v264_v1, %v2327_v40  ;;  %v267_v6 = vsel %vm203_vm4, %v266_v2, %v2329_v41  ;;  %v398_v34 = vrot.slane %v2351_v56, 2  ;;  %v401_v35 = vrot.slane %v2353_v57, 2  ;;  %v2033_v1 = vld [vmem:[%s2907_s2 + $0xc4] sm:$0xf0] }
  0xa1   :  { %246 = vmatmul.bf16.vlgmr.msrb.gmra.mxu0 %v207_v3  ;;  %1664 = vmatmul.msk.bf16.vlgmr.msrb.gmra.mxu1 %vm228_vm3, %v208_v4  ;;  %v268_v8 = vpack.c.b16 %v265_v5, %v265_v5  ;;  %v269_v9 = vpack.c.b16 %v267_v6, %v267_v6  ;;  %v331_v43 = vsel %vm203_vm4, %v330_v25, %v329_v23  ;;  %v635_v53 = vsel %vm228_vm3, %v1785_v42, 0  ;;  %v1793_v3 = vld [vmem:[%s2907_s2 + $0xe0] sm:$0xf]  ;;  %v2037_v4 = vld [vmem:[%s2907_s2 + $0xe4] sm:$0xf0] }
  0xa2   :  { %507 = vmatpush.bf16.xpose.msrb.mxu0 %v1739_v58  ;;  %520 = vmatpush.bf16.xpose.msrb.mxu1 %v499_v10  ;;  %v334_v44 = vsel %vm203_vm4, %v333_v26, %v332_v24  ;;  %v399_v48 = vsel %vm203_vm4, %v398_v34, %v397_v30  ;;  %v402_v49 = vsel %vm203_vm4, %v401_v35, %v400_v31  ;;  %v1774_v58 = vld [vmem:[%s2907_s2 + $0xc8] sm:$0xf0]  ;;  %v466_v10 = vrot.slane %v2351_v56, 3  ;;  %v2043_v23 = vld [vmem:[%s2907_s2 + $0x114] sm:$0xf0] }
  0xa3   :  { %306 = vmatmul.bf16.vlgmr.msrb.gmra.mxu2 %v268_v8  ;;  %1681 = vmatmul.msk.bf16.vlgmr.msrb.gmra.mxu3 %vm228_vm3, %v269_v9  ;;  %v335_v51 = vpack.c.b16 %v331_v43, %v331_v43  ;;  %v336_v52 = vpack.c.b16 %v334_v44, %v334_v44  ;;  %v403_v59 = vpack.c.b16 %v399_v48, %v399_v48  ;;  %v468_v8 = vrot.slane %v2329_v41, 4  ;;  %v2044_v44 = vld [vmem:[%s2907_s2 + $0x124] sm:$0xf] }
  0xa4   :  { %575 = vmatpush.bf16.xpose.msrb.mxu2 %v1760_v7  ;;  %588 = vmatpush.bf16.xpose.msrb.mxu3 %v567_v13  ;;  %v404_v60 = vpack.c.b16 %v402_v49, %v402_v49  ;;  %v1777_v2 = vor.u32 %v2032_v55, %v1774_v58  ;;  %v1798_v5 = vor.u32 %v2036_v62, %v1795_v63  ;;  %v465_v7 = vrot.slane %v2327_v40, 4  ;;  %v2042_v13 = vld [vmem:[%s2907_s2 + $0x114] sm:$0xf]  ;;  %v1835_v49 = vld [vmem:[%s2907_s2 + $0x120] sm:$0xf]  ;;  %v156_v63 = vpop.f32.mrf.mxu2 }
  0xa5   :  { %v1773_v6 = vor.u32 %v2033_v1, %v1772_v0  ;;  %v469_v11 = vrot.slane %v2353_v57, 3  ;;  %v1794_v12 = vor.u32 %v2037_v4, %v1793_v3  ;;  %v534_v18 = vrot.slane %v2351_v56, 4  ;;  %v1866_v62 = vld [vmem:[%s2907_s2 + $0x158] sm:$0xf0]  ;;  %v170_v0 = vpop.f32.mrf.mxu3 }
  0xa6   :  { %v632_v9 = vsel %vm228_vm3, %v1777_v2, 0  ;;  %v700_v17 = vsel %vm228_vm3, %v1798_v5, 0  ;;  %v537_v19 = vrot.slane %v2353_v57, 4  ;;  %v1827_v24 = vor.u32 %v2042_v13, %v1824_v14  ;;  %v1885_v13 = vld [vmem:[%s2907_s2 + $0x170] sm:$0xf] }
  0xa7   :  { %v467_v25 = vsel %vm203_vm4, %v466_v10, %v465_v7  ;;  %v470_v26 = vsel %vm203_vm4, %v469_v11, %v468_v8  ;;  %v535_v30 = vsel %vm203_vm4, %v534_v18, %v533_v15  ;;  %v847_v43 = vsel %vm228_vm3, %v1848_v29, 0  ;;  %v1887_v7 = vld [vmem:[%s2907_s2 + $0x178] sm:$0xf0]  ;;  %v2055_v14 = vld [vmem:[%s2907_s2 + $0x174] sm:$0xf0] }
  0xa8   :  { %v538_v31 = vsel %vm203_vm4, %v537_v19, %v536_v16  ;;  %v472_v34 = vpack.c.b16 %v470_v26, %v470_v26  ;;  %v781_v35 = vsel %vm228_vm3, %v1827_v24, 0  ;;  %v539_v39 = vpack.c.b16 %v535_v30, %v535_v30 }
  0xa9   :  { %v540_v42 = vpack.c.b16 %v538_v31, %v538_v31  ;;  %v1819_v48 = vor.u32 %v2040_v37, %v1816_v38  ;;  %v604_v58 = vrot.slane %v2329_v41, 6  ;;  %v669_v1 = vrot.slane %v2327_v40, 7 }
  0xaa   :  { %508 = vmatpush.bf16.xpose.msrb.mxu0 %v1731_v22  ;;  %521 = vmatpush.bf16.xpose.msrb.mxu1 %v496_v32  ;;  %v1822_v22 = vld [vmem:[%s2907_s2 + $0x110] sm:$0xf]  ;;  %v670_v2 = vrot.slane %v2351_v56, 6  ;;  %v672_v4 = vrot.slane %v2329_v41, 7  ;;  %v673_v5 = vrot.slane %v2353_v57, 6  ;;  %v179_v8 = vmax.f32 %v156_v63, 0.0 }
  0xab   :  { %v1823_v32 = vor.u32 %v2043_v23, %v1822_v22  ;;  %v778_v55 = vsel %vm228_vm3, %v1819_v48, 0  ;;  %v2051_v41 = vld [vmem:[%s2907_s2 + $0x154] sm:$0xf0]  ;;  %v1886_v26 = vor.u32 %v2055_v14, %v1885_v13  ;;  %v2060_v14 = vld [vmem:[%s2907_s2 + $0x1a4] sm:$0xf] }
  0xac   :  { %576 = vmatpush.bf16.xpose.msrb.mxu2 %v1752_v27  ;;  %589 = vmatpush.bf16.xpose.msrb.mxu3 %v564_v33  ;;  %v1843_v27 = vld [vmem:[%s2907_s2 + $0x130] sm:$0xf]  ;;  %v471_v33 = vpack.c.b16 %v467_v25, %v467_v25  ;;  %v671_v16 = vsel %vm203_vm4, %v670_v2, %v669_v1  ;;  %v734_v24 = vpack.c.bf16 %v179_v8, %v179_v8 }
  0xad   :  { %v1844_v36 = vor.u32 %v2047_v28, %v1843_v27  ;;  %v2048_v27 = vld [vmem:[%s2907_s2 + $0x144] sm:$0xf]  ;;  %v1858_v28 = vld [vmem:[%s2907_s2 + $0x148] sm:$0xf0]  ;;  %v675_v29 = vpack.c.b16 %v671_v16, %v671_v16  ;;  %v1898_v16 = vld [vmem:[%s2907_s2 + $0x180] sm:$0xf] }
  0xae   :  { %v1861_v37 = vor.u32 %v2048_v27, %v1858_v28  ;;  %v2066_v27 = vld [vmem:[%s2907_s2 + $0x1d4] sm:$0xf]  ;;  %v1950_v28 = vld [vmem:[%s2907_s2 + $0x1d8] sm:$0xf0] }
  0xb0   :  { %v912_v48 = vsel %vm228_vm3, %v1861_v37, 0  ;;  %v2067_v37 = vld [vmem:[%s2907_s2 + $0x1d4] sm:$0xf0] }
  0xb1   :  { %373 = vmatmul.bf16.vlgmr.msra.gmra.mxu0 %v335_v51  ;;  %1702 = vmatmul.msk.bf16.vlgmr.msra.gmra.mxu1 %vm228_vm3, %v336_v52  ;;  %v1840_v51 = vor.u32 %v2044_v44, %v1837_v45  ;;  %v1815_v52 = vor.u32 %v2041_v47, %v1814_v46  ;;  %v2053_v44 = vld [vmem:[%s2907_s2 + $0x164] sm:$0xf0] }
  0xb2   :  { %643 = vmatpush.bf16.xpose.msra.mxu0 %v1781_v50  ;;  %656 = vmatpush.bf16.xpose.msra.mxu1 %v635_v53  ;;  %v2045_v50 = vld [vmem:[%s2907_s2 + $0x124] sm:$0xf0]  ;;  %v601_v53 = vrot.slane %v2327_v40, 6  ;;  %v1864_v40 = vld [vmem:[%s2907_s2 + $0x150] sm:$0xf] }
  0xb3   :  { %441 = vmatmul.bf16.vlgmr.msra.gmra.mxu2 %v403_v59  ;;  %1723 = vmatmul.msk.bf16.vlgmr.msra.gmra.mxu3 %vm228_vm3, %v404_v60  ;;  %v605_v59 = vrot.slane %v2353_v57, 5  ;;  %v1836_v60 = vor.u32 %v2045_v50, %v1835_v49  ;;  %v844_v3 = vsel %vm228_vm3, %v1840_v51, 0  ;;  %v97_v57 = vpop.f32.mrf.mxu0  ;;  %v1865_v18 = vor.u32 %v2051_v41, %v1864_v40 }
  0xb4   :  { %711 = vmatpush.bf16.xpose.msra.mxu2 %v1802_v54  ;;  %724 = vmatpush.bf16.xpose.msra.mxu3 %v703_v61  ;;  %v602_v54 = vrot.slane %v2351_v56, 5  ;;  %v2050_v61 = vld [vmem:[%s2907_s2 + $0x154] sm:$0xf]  ;;  %v175_v19 = vmax.f32 %v97_v57, 0.0 }
  0xb5   :  { %v1869_v56 = vor.u32 %v2050_v61, %v1866_v62  ;;  %v606_v11 = vsel %vm203_vm4, %v605_v59, %v604_v58  ;;  %v2062_v58 = vld [vmem:[%s2907_s2 + $0x1b4] sm:$0xf]  ;;  %v1929_v59 = vld [vmem:[%s2907_s2 + $0x1b8] sm:$0xf0]  ;;  %v2059_v61 = vld [vmem:[%s2907_s2 + $0x194] sm:$0xf0] }
  0xb6   :  { %v603_v10 = vsel %vm203_vm4, %v602_v54, %v601_v53  ;;  %v608_v21 = vpack.c.b16 %v606_v11, %v606_v11  ;;  %v2058_v53 = vld [vmem:[%s2907_s2 + $0x194] sm:$0xf]  ;;  %v1908_v54 = vld [vmem:[%s2907_s2 + $0x198] sm:$0xf0] }
  0xb7   :  { %v607_v20 = vpack.c.b16 %v603_v10, %v603_v10  ;;  %v915_v22 = vsel %vm228_vm3, %v1869_v56, 0  ;;  %v1911_v62 = vor.u32 %v2058_v53, %v1908_v54  ;;  %v1900_v10 = vld [vmem:[%s2907_s2 + $0x188] sm:$0xf0] }
  0xb9   :  { %v1051_v57 = vsel %vm228_vm3, %v1911_v62, 0  ;;  %v1942_v62 = vld [vmem:[%s2907_s2 + $0x1c8] sm:$0xf0] }
  0xba   :  { %644 = vmatpush.bf16.xpose.msra.mxu0 %v1773_v6  ;;  %657 = vmatpush.bf16.xpose.msra.mxu1 %v632_v9  ;;  %v2054_v6 = vld [vmem:[%s2907_s2 + $0x174] sm:$0xf]  ;;  %v180_v9 = vmax.f32 %v170_v0, 0.0 }
  0xbb   :  { %v1890_v15 = vor.u32 %v2054_v6, %v1887_v7 }
  0xbc   :  { %712 = vmatpush.bf16.xpose.msra.mxu2 %v1794_v12  ;;  %725 = vmatpush.bf16.xpose.msra.mxu3 %v700_v17  ;;  %v111_v12 = vpop.f32.mrf.mxu1  ;;  %v674_v17 = vsel %vm203_vm4, %v673_v5, %v672_v4  ;;  %v735_v25 = vpack.c.bf16 %v180_v9, %v180_v9  ;;  %v2063_v4 = vld [vmem:[%s2907_s2 + $0x1b4] sm:$0xf0]  ;;  %v1932_v5 = vor.u32 %v2062_v58, %v1929_v59  ;;  %v2056_v9 = vld [vmem:[%s2907_s2 + $0x184] sm:$0xf] }
  0xbd   :  { %v176_v23 = vmax.f32 %v111_v12, 0.0  ;;  %v676_v30 = vpack.c.b16 %v674_v17, %v674_v17  ;;  %v983_v31 = vsel %vm228_vm3, %v1890_v15, 0  ;;  %v1921_v15 = vld [vmem:[%s2907_s2 + $0x1a8] sm:$0xf0]  ;;  %v2057_v17 = vld [vmem:[%s2907_s2 + $0x184] sm:$0xf0] }
  0xbe   :  { %v1119_v13 = vsel %vm228_vm3, %v1932_v5, 0  ;;  %v2065_v5 = vld [vmem:[%s2907_s2 + $0x1c4] sm:$0xf0] }
  0xbf   :  { %v733_v38 = vpack.c.bf16 %v176_v23, %v176_v23 }
  0xc1   :  { %509 = vmatmul.bf16.vlgmr.msrb.gmra.mxu0 %v471_v33  ;;  %1744 = vmatmul.msk.bf16.vlgmr.msrb.gmra.mxu1 %vm228_vm3, %v472_v34  ;;  %v1879_v33 = vld [vmem:[%s2907_s2 + $0x168] sm:$0xf0]  ;;  %v732_v34 = vpack.c.bf16 %v175_v19, %v175_v19  ;;  %v2604_v49 = vunpack.c.l.b16 %v733_v38  ;;  %v1919_v19 = vld [vmem:[%s2907_s2 + $0x1a0] sm:$0xf]  ;;  %v1953_v38 = vor.u32 %v2066_v27, %v1950_v28 }
  0xc2   :  { %789 = vmatpush.bf16.xpose.msrb.mxu0 %v1823_v32  ;;  %802 = vmatpush.bf16.xpose.msrb.mxu1 %v781_v35  ;;  %v2052_v32 = vld [vmem:[%s2907_s2 + $0x164] sm:$0xf]  ;;  %v1856_v35 = vld [vmem:[%s2907_s2 + $0x140] sm:$0xf] }
  0xc3   :  { %577 = vmatmul.bf16.vlgmr.msrb.gmra.mxu2 %v539_v39  ;;  %1765 = vmatmul.msk.bf16.vlgmr.msrb.gmra.mxu3 %vm228_vm3, %v540_v42  ;;  %v2591_v39 = vunpack.c.l.b16 %v734_v24  ;;  %v2593_v42 = vunpack.c.l.b16 %v735_v25  ;;  %v1882_v45 = vor.u32 %v2052_v32, %v1879_v33  ;;  %v2601_v47 = vunpack.c.l.b16 %v732_v34  ;;  %v2070_v34 = vld [vmem:[%s2907_s2 + $0x1f4] sm:$0xf] }
  0xc4   :  { %855 = vmatpush.bf16.xpose.msrb.mxu2 %v1844_v36  ;;  %868 = vmatpush.bf16.xpose.msrb.mxu3 %v847_v43  ;;  %v2049_v36 = vld [vmem:[%s2907_s2 + $0x144] sm:$0xf0]  ;;  %v1877_v43 = vld [vmem:[%s2907_s2 + $0x160] sm:$0xf]  ;;  %v817_v2 = vrot.slane %v2604_v49, 1  ;;  %v1187_v59 = vsel %vm228_vm3, %v1953_v38, 0 }
  0xc5   :  { %v1857_v46 = vor.u32 %v2049_v36, %v1856_v35  ;;  %v749_v50 = vrot.slane %v2591_v39, 7  ;;  %v751_v51 = vrot.slane %v2593_v42, 7  ;;  %v815_v1 = vrot.slane %v2601_v47, 1  ;;  %v1971_v35 = vld [vmem:[%s2907_s2 + $0x1f8] sm:$0xf0] }
  0xc6   :  { %v818_v7 = vsel %vm203_vm4, %v2593_v42, %v817_v2  ;;  %v882_v24 = vrot.slane %v2591_v39, 1  ;;  %v885_v25 = vrot.slane %v2593_v42, 1  ;;  %v950_v32 = vrot.slane %v2591_v39, 2  ;;  %v1948_v36 = vld [vmem:[%s2907_s2 + $0x1d0] sm:$0xf] }
  0xc7   :  { %v750_v63 = vsel %vm203_vm4, %v749_v50, %v2601_v47  ;;  %v752_v0 = vsel %vm203_vm4, %v751_v51, %v2604_v49  ;;  %v816_v6 = vsel %vm203_vm4, %v2591_v39, %v815_v1  ;;  %v820_v12 = vpack.c.b16 %v818_v7, %v818_v7  ;;  %v2071_v50 = vld [vmem:[%s2907_s2 + $0x1f4] sm:$0xf0]  ;;  %v2068_v2 = vld [vmem:[%s2907_s2 + $0x1e4] sm:$0xf]  ;;  %v1961_v7 = vld [vmem:[%s2907_s2 + $0x1e0] sm:$0xf] }
  0xc8   :  { %v753_v41 = vpack.c.b16 %v750_v63, %v750_v63  ;;  %v754_v56 = vpack.c.b16 %v752_v0, %v752_v0  ;;  %v819_v11 = vpack.c.b16 %v816_v6, %v816_v6  ;;  %v953_v33 = vrot.slane %v2593_v42, 2 }
  0xc9   :  { %v1974_v51 = vor.u32 %v2070_v34, %v1971_v35  ;;  %v1949_v54 = vor.u32 %v2067_v37, %v1948_v36  ;;  %v1157_v27 = vrot.slane %v2593_v42, 5  ;;  %v1153_v28 = vrot.slane %v2601_v47, 6 }
  0xca   :  { %790 = vmatpush.bf16.xpose.msrb.mxu0 %v1815_v52  ;;  %803 = vmatpush.bf16.xpose.msrb.mxu1 %v778_v55  ;;  %v1878_v52 = vor.u32 %v2053_v44, %v1877_v43  ;;  %v980_v55 = vsel %vm228_vm3, %v1882_v45, 0  ;;  %v949_v45 = vrot.slane %v2601_v47, 3  ;;  %v1221_v34 = vrot.slane %v2601_v47, 7 }
  0xcb   :  { %v1255_v1 = vsel %vm228_vm3, %v1974_v51, 0  ;;  %v1224_v35 = vrot.slane %v2604_v49, 7 }
  0xcc   :  { %856 = vmatpush.bf16.xpose.msrb.mxu2 %v1836_v60  ;;  %869 = vmatpush.bf16.xpose.msrb.mxu3 %v844_v3  ;;  %v1906_v60 = vld [vmem:[%s2907_s2 + $0x190] sm:$0xf] }
  0xcd   :  { %v1927_v3 = vld [vmem:[%s2907_s2 + $0x1b0] sm:$0xf]  ;;  %v1907_v40 = vor.u32 %v2059_v61, %v1906_v60  ;;  %v2064_v61 = vld [vmem:[%s2907_s2 + $0x1c4] sm:$0xf] }
  0xce   :  { %v1928_v8 = vor.u32 %v2063_v4, %v1927_v3  ;;  %v1963_v3 = vld [vmem:[%s2907_s2 + $0x1e8] sm:$0xf0]  ;;  %v1940_v4 = vld [vmem:[%s2907_s2 + $0x1c0] sm:$0xf]  ;;  %v1945_v6 = vor.u32 %v2064_v61, %v1942_v62 }
  0xd1   :  { %645 = vmatmul.bf16.vlgmr.msra.gmra.mxu0 %v607_v20  ;;  %1786 = vmatmul.msk.bf16.vlgmr.msra.gmra.mxu1 %vm228_vm3, %v608_v21  ;;  %v2061_v20 = vld [vmem:[%s2907_s2 + $0x1a4] sm:$0xf0]  ;;  %v1924_v21 = vor.u32 %v2060_v14, %v1921_v15  ;;  %v1086_v14 = vrot.slane %v2591_v39, 4  ;;  %v1089_v15 = vrot.slane %v2593_v42, 4 }
  0xd2   :  { %923 = vmatpush.bf16.xpose.msra.mxu0 %v1865_v18  ;;  %936 = vmatpush.bf16.xpose.msra.mxu1 %v915_v22  ;;  %v1903_v18 = vor.u32 %v2056_v9, %v1900_v10  ;;  %v1899_v22 = vor.u32 %v2057_v17, %v1898_v16  ;;  %v1021_v9 = vrot.slane %v2593_v42, 3 }
  0xd3   :  { %713 = vmatmul.bf16.vlgmr.msra.gmra.mxu2 %v675_v29  ;;  %1807 = vmatmul.msk.bf16.vlgmr.msra.gmra.mxu3 %vm228_vm3, %v676_v30  ;;  %v881_v29 = vrot.slane %v2601_v47, 2  ;;  %v884_v30 = vrot.slane %v2604_v49, 2 }
  0xd4   :  { %991 = vmatpush.bf16.xpose.msra.mxu2 %v1886_v26  ;;  %1004 = vmatpush.bf16.xpose.msra.mxu3 %v983_v31  ;;  %v1048_v23 = vsel %vm228_vm3, %v1903_v18, 0  ;;  %v1920_v26 = vor.u32 %v2061_v20, %v1919_v19  ;;  %v1116_v31 = vsel %vm228_vm3, %v1924_v21, 0  ;;  %v1085_v18 = vrot.slane %v2601_v47, 5 }
  0xd5   :  { %v883_v43 = vsel %vm203_vm4, %v882_v24, %v881_v29  ;;  %v886_v44 = vsel %vm203_vm4, %v885_v25, %v884_v30  ;;  %v1088_v19 = vrot.slane %v2604_v49, 5  ;;  %v1156_v29 = vrot.slane %v2604_v49, 6 }
  0xd6   :  { %v888_v58 = vpack.c.b16 %v886_v44, %v886_v44  ;;  %v1087_v20 = vsel %vm203_vm4, %v1086_v14, %v1085_v18  ;;  %v1222_v30 = vrot.slane %v2591_v39, 6 }
  0xd7   :  { %v1090_v21 = vsel %vm203_vm4, %v1089_v15, %v1088_v19  ;;  %v1091_v24 = vpack.c.b16 %v1087_v20, %v1087_v20 }
  0xd8   :  { %v1092_v25 = vpack.c.b16 %v1090_v21, %v1090_v21  ;;  %v1223_v36 = vsel %vm203_vm4, %v1222_v30, %v1221_v34  ;;  %v1289_v30 = vld [vmem:[%s2908_s3 + $0x10] sm:$0xff] }
  0xda   :  { %924 = vmatpush.bf16.xpose.msra.mxu0 %v1857_v46  ;;  %937 = vmatpush.bf16.xpose.msra.mxu1 %v912_v48  ;;  %v952_v46 = vrot.slane %v2604_v49, 3  ;;  %v1969_v48 = vld [vmem:[%s2907_s2 + $0x1f0] sm:$0xf] }
  0xdb   :  { %v1970_v60 = vor.u32 %v2071_v50, %v1969_v48 }
  0xdc   :  { %992 = vmatpush.bf16.xpose.msra.mxu2 %v1878_v52  ;;  %1005 = vmatpush.bf16.xpose.msra.mxu3 %v980_v55  ;;  %v951_v52 = vsel %vm203_vm4, %v950_v32, %v949_v45  ;;  %v954_v53 = vsel %vm203_vm4, %v953_v33, %v952_v46  ;;  %v887_v55 = vpack.c.b16 %v883_v43, %v883_v43 }
  0xdd   :  { %v955_v63 = vpack.c.b16 %v951_v52, %v951_v52  ;;  %v956_v0 = vpack.c.b16 %v954_v53, %v954_v53  ;;  %v1158_v33 = vsel %vm203_vm4, %v1157_v27, %v1156_v29  ;;  %v1290_v29 = vld [vmem:[%s2908_s3 + $0x18] sm:$0xff] }
  0xde   :  { %v1160_v43 = vpack.c.b16 %v1158_v33, %v1158_v33 }
  0xe1   :  { %791 = vmatmul.bf16.vlgmr.msrb.gmra.mxu0 %v753_v41  ;;  %1828 = vmatmul.msk.bf16.vlgmr.msrb.gmra.mxu1 %vm228_vm3, %v754_v56  ;;  %v1966_v41 = vor.u32 %v2068_v2, %v1963_v3  ;;  %v1941_v56 = vor.u32 %v2065_v5, %v1940_v4 }
  0xe2   :  { %1059 = vmatpush.bf16.xpose.msrb.mxu0 %v1907_v40  ;;  %1072 = vmatpush.bf16.xpose.msrb.mxu1 %v1051_v57  ;;  %v2069_v40 = vld [vmem:[%s2907_s2 + $0x1e4] sm:$0xf0]  ;;  %v1184_v57 = vsel %vm228_vm3, %v1945_v6, 0 }
  0xe3   :  { %857 = vmatmul.bf16.vlgmr.msrb.gmra.mxu2 %v819_v11  ;;  %1849 = vmatmul.msk.bf16.vlgmr.msrb.gmra.mxu3 %vm228_vm3, %v820_v12  ;;  %v1962_v10 = vor.u32 %v2069_v40, %v1961_v7  ;;  %v1252_v11 = vsel %vm228_vm3, %v1966_v41, 0  ;;  %v1017_v12 = vrot.slane %v2601_v47, 4 }
  0xe4   :  { %1127 = vmatpush.bf16.xpose.msrb.mxu2 %v1928_v8  ;;  %1140 = vmatpush.bf16.xpose.msrb.mxu3 %v1119_v13  ;;  %v1018_v8 = vrot.slane %v2591_v39, 3  ;;  %v1020_v13 = vrot.slane %v2604_v49, 4 }
  0xe6   :  { %v1019_v16 = vsel %vm203_vm4, %v1018_v8, %v1017_v12  ;;  %v1022_v17 = vsel %vm203_vm4, %v1021_v9, %v1020_v13 }
  0xea   :  { %1060 = vmatpush.bf16.xpose.msrb.mxu0 %v1899_v22  ;;  %1073 = vmatpush.bf16.xpose.msrb.mxu1 %v1048_v23  ;;  %v1023_v22 = vpack.c.b16 %v1019_v16, %v1019_v16  ;;  %v1024_v23 = vpack.c.b16 %v1022_v17, %v1022_v17 }
  0xec   :  { %1128 = vmatpush.bf16.xpose.msrb.mxu2 %v1920_v26  ;;  %1141 = vmatpush.bf16.xpose.msrb.mxu3 %v1116_v31  ;;  %v1154_v26 = vrot.slane %v2591_v39, 5  ;;  %v1225_v31 = vrot.slane %v2593_v42, 6  ;;  %v1227_v39 = vpack.c.b16 %v1223_v36, %v1223_v36 }
  0xee   :  { %v1155_v32 = vsel %vm203_vm4, %v1154_v26, %v1153_v28  ;;  %v1226_v37 = vsel %vm203_vm4, %v1225_v31, %v1224_v35 }
  0xef   :  { %v1159_v38 = vpack.c.b16 %v1155_v32, %v1155_v32  ;;  %v1228_v44 = vpack.c.b16 %v1226_v37, %v1226_v37  ;;  %v1288_v37 = vld [vmem:[%s2908_s3 + $0x8] sm:$0xff] }
  0xf1   :  { %925 = vmatmul.bf16.vlgmr.msra.gmra.mxu0 %v887_v55  ;;  %1870 = vmatmul.msk.bf16.vlgmr.msra.gmra.mxu1 %vm228_vm3, %v888_v58 }
  0xf2   :  { %1195 = vmatpush.bf16.xpose.msra.mxu0 %v1949_v54  ;;  %1208 = vmatpush.bf16.xpose.msra.mxu1 %v1187_v59 }
  0xf3   :  { %993 = vmatmul.bf16.vlgmr.msra.gmra.mxu2 %v955_v63  ;;  %1891 = vmatmul.msk.bf16.vlgmr.msra.gmra.mxu3 %vm228_vm3, %v956_v0 }
  0xf4   :  { %1263 = vmatpush.bf16.xpose.msra.mxu2 %v1970_v60  ;;  %1276 = vmatpush.bf16.xpose.msra.mxu3 %v1255_v1 }
  0xfa   :  { %1196 = vmatpush.bf16.xpose.msra.mxu0 %v1941_v56  ;;  %1209 = vmatpush.bf16.xpose.msra.mxu1 %v1184_v57 }
  0xfc   :  { %1264 = vmatpush.bf16.xpose.msra.mxu2 %v1962_v10  ;;  %1277 = vmatpush.bf16.xpose.msra.mxu3 %v1252_v11 }
 0x101   :  { %1061 = vmatmul.bf16.vlgmr.msrb.gmra.mxu0 %v1023_v22  ;;  %1912 = vmatmul.msk.bf16.vlgmr.msrb.gmra.mxu1 %vm228_vm3, %v1024_v23 }
 0x102   :  { %1308 = vmatpush.msrb.mxu0 %v1290_v29 }
 0x103   :  { %1129 = vmatmul.bf16.vlgmr.msrb.gmra.mxu2 %v1091_v24  ;;  %1933 = vmatmul.msk.bf16.vlgmr.msrb.gmra.mxu3 %vm228_vm3, %v1092_v25 }
 0x104   :  { %1309 = vmatpush.msrb.mxu0 %v1289_v30  ;;  %v1984_v30 = vld [vmem:[%s2909_s4 + $0x78] sm:$0xff] }
 0x106   :  { %1310 = vmatpush.msrb.mxu0 %v1288_v37  ;;  %v1992_v37 = vld [vmem:[%s2909_s4 + $0xb8] sm:$0xff] }
 0x111   :  { %1197 = vmatmul.bf16.vlgmr.msra.gmra.mxu0 %v1159_v38  ;;  %1954 = vmatmul.msk.bf16.vlgmr.msra.gmra.mxu1 %vm228_vm3, %v1160_v43  ;;  %v1287_v38 = vld [vmem:[%s2908_s3] sm:$0xff] }
 0x112   :  { %1311 = vmatpush.msrb.mxu0 %v1287_v38  ;;  %v1988_v38 = vld [vmem:[%s2909_s4 + $0x98] sm:$0xff] }
 0x113   :  { %1265 = vmatmul.bf16.vlgmr.msra.gmra.mxu2 %v1227_v39  ;;  %1975 = vmatmul.msk.bf16.vlgmr.msra.gmra.mxu3 %vm228_vm3, %v1228_v44  ;;  %v2782_v44 = vld [vmem:[%s2911_s6] sm:$0x3]  ;;  %vm1582_vm3 = vcmask 1024  }
 0x11e   :  { %v247_v42 = vpop.f32.mrf.mxu0  ;;  %v260_v45 = vpop.f32.mrf.mxu1 }
 0x11f   :  { %v261_v46 = vadd.f32 %v260_v45, %v247_v42  ;;  %v1333_v42 = vld [vmem:[%s2909_s4 + $0x48] sm:$0xff]  ;;  %v1334_v45 = vld [vmem:[%s2909_s4 + $0x50] sm:$0xff] }
 0x120   :  { %1360 = vmatpush.msrb.mxu1 %v1333_v42  ;;  %1380 = vmatpush.msrb.mxu2 %v1334_v45  ;;  %v1982_v42 = vld [vmem:[%s2909_s4 + $0x68] sm:$0xff]  ;;  %v1983_v45 = vld [vmem:[%s2909_s4 + $0x70] sm:$0xff] }
 0x126   :  { %v249_v47 = vpop.f32.mrf.mxu0  ;;  %v262_v48 = vpop.f32.mrf.mxu1 }
 0x127   :  { %v307_v49 = vpop.f32.mrf.mxu2  ;;  %v320_v50 = vpop.f32.mrf.mxu3  ;;  %v1330_v47 = vld [vmem:[%s2909_s4 + $0x30] sm:$0xff]  ;;  %v1331_v48 = vld [vmem:[%s2909_s4 + $0x38] sm:$0xff] }
 0x128   :  { %v308_v51 = vadd.f32 %v307_v49, %v261_v46  ;;  %v2118_v46 = vmov 32   ;;  %1361 = vmatpush.msrb.mxu1 %v1330_v47  ;;  %1381 = vmatpush.msrb.mxu2 %v1331_v48 }
 0x129   :  { %2076 = vset.pattern.permute.xlu0 %v2118_v46  ;;  %v1291_v46 = vld [vmem:[%s2910_s5 + $0x1] ss:$0 sm:$0xff] }
 0x12a   :  { %v321_v52 = vadd.f32 %v320_v50, %v308_v51  ;;  %1320 = vperm.xlu0 %2076, %v2782_v44   ;;  %v1990_v50 = vld [vmem:[%s2909_s4 + $0xa8] sm:$0xff]  ;;  %v1335_v51 = vld [vmem:[%s2909_s4 + $0x58] sm:$0xff] }
 0x12b   :  { %1445 = vmatpush.msra.mxu0 %v1990_v50  ;;  %1400 = vmatpush.msrb.mxu3 %v1335_v51  ;;  %v1993_v50 = vld [vmem:[%s2910_s5 + $0x3] ss:$8 sm:$0x7]  ;;  %v1977_v51 = vld [vmem:[%s2910_s5 + $0x2] ss:$8 sm:$0x7] }
 0x12e   :  { %v374_v53 = vpop.f32.mrf.mxu0  ;;  %v387_v54 = vpop.f32.mrf.mxu1 }
 0x12f   :  { %v309_v55 = vpop.f32.mrf.mxu2  ;;  %v322_v58 = vpop.f32.mrf.mxu3  ;;  %v388_v59 = vadd.f32 %v387_v54, %v374_v53  ;;  %v1327_v53 = vld [vmem:[%s2909_s4 + $0x18] sm:$0xff] }
 0x130   :  { %1362 = vmatpush.msrb.mxu1 %v1327_v53 }
 0x131   :  { %v391_v60 = vadd.f32 %v388_v59, %v321_v52  ;;  %v1987_v52 = vld [vmem:[%s2909_s4 + $0x90] sm:$0xff] }
 0x132   :  { %1446 = vmatpush.msra.mxu0 %v1987_v52  ;;  %v1424_v52 = vperm.slane %v1993_v50, 0 }
 0x134   :  { %1447 = vmatpush.msra.mxu0 %v1984_v30 }
 0x136   :  { %v376_v61 = vpop.f32.mrf.mxu0  ;;  %v389_v62 = vpop.f32.mrf.mxu1 }
 0x137   :  { %v442_v63 = vpop.f32.mrf.mxu2  ;;  %v455_v0 = vpop.f32.mrf.mxu3 }
 0x138   :  { %v456_v1 = vadd.f32 %v455_v0, %v442_v63 }
 0x13a   :  { %v459_v2 = vadd.f32 %v456_v1, %v391_v60 }
 0x13e   :  { %v510_v3 = vpop.f32.mrf.mxu0  ;;  %v523_v4 = vpop.f32.mrf.mxu1 }
 0x13f   :  { %v444_v5 = vpop.f32.mrf.mxu2  ;;  %v457_v6 = vpop.f32.mrf.mxu3  ;;  %v524_v7 = vadd.f32 %v523_v4, %v510_v3 }
 0x141   :  { %v527_v40 = vadd.f32 %v524_v7, %v459_v2 }
 0x146   :  { %v512_v41 = vpop.f32.mrf.mxu0  ;;  %v525_v56 = vpop.f32.mrf.mxu1 }
 0x147   :  { %v578_v57 = vpop.f32.mrf.mxu2  ;;  %v591_v8 = vpop.f32.mrf.mxu3 }
 0x148   :  { %v592_v49 = vadd.f32 %v591_v8, %v578_v57 }
 0x14a   :  { %v595_v55 = vadd.f32 %v592_v49, %v527_v40 }
 0x14e   :  { %v646_v9 = vpop.f32.mrf.mxu0  ;;  %v659_v10 = vpop.f32.mrf.mxu1 }
 0x14f   :  { %v580_v11 = vpop.f32.mrf.mxu2  ;;  %v593_v12 = vpop.f32.mrf.mxu3  ;;  %v660_v54 = vadd.f32 %v659_v10, %v646_v9 }
 0x151   :  { %v663_v63 = vadd.f32 %v660_v54, %v595_v55  ;;  %v1339_v54 = vperm.slane %v1977_v51, 0 }
 0x156   :  { %v648_v13 = vpop.f32.mrf.mxu0  ;;  %v661_v14 = vpop.f32.mrf.mxu1 }
 0x157   :  { %v714_v15 = vpop.f32.mrf.mxu2  ;;  %v727_v16 = vpop.f32.mrf.mxu3 }
 0x158   :  { %v728_v58 = vadd.f32 %v727_v16, %v714_v15 }
 0x15a   :  { %v731_v1 = vadd.f32 %v728_v58, %v663_v63  ;;  %v1425_v63 = vperm.slane %v1993_v50, 1 }
 0x15e   :  { %v792_v17 = vpop.f32.mrf.mxu0  ;;  %v805_v18 = vpop.f32.mrf.mxu1 }
 0x15f   :  { %v716_v19 = vpop.f32.mrf.mxu2  ;;  %v729_v20 = vpop.f32.mrf.mxu3  ;;  %v806_v0 = vadd.f32 %v805_v18, %v792_v17 }
 0x160   :  { %v1284_v20 = vld [vmem:[%s2910_s5] ss:$0 sm:$0xff] }
 0x161   :  { %v809_v3 = vadd.f32 %v806_v0, %v731_v1 }
 0x166   :  { %v794_v21 = vpop.f32.mrf.mxu0  ;;  %v807_v22 = vpop.f32.mrf.mxu1 }
 0x167   :  { %v858_v23 = vpop.f32.mrf.mxu2  ;;  %v871_v24 = vpop.f32.mrf.mxu3 }
 0x168   :  { %v872_v2 = vadd.f32 %v871_v24, %v858_v23 }
 0x16a   :  { %v875_v5 = vadd.f32 %v872_v2, %v809_v3 }
 0x16e   :  { %v926_v25 = vpop.f32.mrf.mxu0  ;;  %v939_v26 = vpop.f32.mrf.mxu1 }
 0x16f   :  { %v860_v27 = vpop.f32.mrf.mxu2  ;;  %v873_v28 = vpop.f32.mrf.mxu3  ;;  %v940_v4 = vadd.f32 %v939_v26, %v926_v25  ;;  %v1328_v26 = vld [vmem:[%s2909_s4 + $0x20] sm:$0xff] }
 0x170   :  { %v1332_v27 = vld [vmem:[%s2909_s4 + $0x40] sm:$0xff]  ;;  %1382 = vmatpush.msrb.mxu2 %v1328_v26 }
 0x171   :  { %v943_v8 = vadd.f32 %v940_v4, %v875_v5  ;;  %v1324_v28 = vld [vmem:[%s2909_s4] sm:$0xff]  ;;  %1401 = vmatpush.msrb.mxu3 %v1332_v27 }
 0x172   :  { %1363 = vmatpush.msrb.mxu1 %v1324_v28 }
 0x176   :  { %v928_v31 = vpop.f32.mrf.mxu0  ;;  %v941_v32 = vpop.f32.mrf.mxu1 }
 0x177   :  { %v994_v33 = vpop.f32.mrf.mxu2  ;;  %v1007_v34 = vpop.f32.mrf.mxu3  ;;  %v1329_v32 = vld [vmem:[%s2909_s4 + $0x28] sm:$0xff] }
 0x178   :  { %v1008_v6 = vadd.f32 %v1007_v34, %v994_v33  ;;  %v1981_v33 = vld [vmem:[%s2909_s4 + $0x60] sm:$0xff]  ;;  %v1325_v34 = vld [vmem:[%s2909_s4 + $0x8] sm:$0xff]  ;;  %1402 = vmatpush.msrb.mxu3 %v1329_v32 }
 0x179   :  { %1383 = vmatpush.msrb.mxu2 %v1325_v34  ;;  %1448 = vmatpush.msra.mxu0 %v1981_v33 }
 0x17a   :  { %v1011_v9 = vadd.f32 %v1008_v6, %v943_v8 }
 0x17b   :  { %1485 = vmatpush.msra.mxu2 %v1992_v37 }
 0x17e   :  { %v1062_v35 = vpop.f32.mrf.mxu0  ;;  %v1075_v36 = vpop.f32.mrf.mxu1 }
 0x17f   :  { %v996_v43 = vpop.f32.mrf.mxu2  ;;  %v1009_v39 = vpop.f32.mrf.mxu3  ;;  %v1076_v40 = vadd.f32 %v1075_v36, %v1062_v35  ;;  %v1326_v35 = vld [vmem:[%s2909_s4 + $0x10] sm:$0xff] }
 0x180   :  { %v1991_v36 = vld [vmem:[%s2909_s4 + $0xb0] sm:$0xff]  ;;  %1403 = vmatpush.msrb.mxu3 %v1326_v35  ;;  %v1989_v43 = vld [vmem:[%s2909_s4 + $0xa0] sm:$0xff] }
 0x181   :  { %v1079_v11 = vadd.f32 %v1076_v40, %v1011_v9  ;;  %1465 = vmatpush.msra.mxu1 %v1991_v36  ;;  %v1985_v39 = vld [vmem:[%s2909_s4 + $0x80] sm:$0xff]  ;;  %1486 = vmatpush.msra.mxu2 %v1989_v43 }
 0x183   :  { %1466 = vmatpush.msra.mxu1 %v1988_v38 }
 0x185   :  { %1467 = vmatpush.msra.mxu1 %v1985_v39 }
 0x186   :  { %v1064_v59 = vpop.f32.mrf.mxu0  ;;  %v1077_v60 = vpop.f32.mrf.mxu1 }
 0x187   :  { %v1130_v61 = vpop.f32.mrf.mxu2  ;;  %v1143_v62 = vpop.f32.mrf.mxu3  ;;  %1468 = vmatpush.msra.mxu1 %v1982_v42 }
 0x188   :  { %v1144_v10 = vadd.f32 %v1143_v62, %v1130_v61  ;;  %v1340_v62 = vperm.slane %v1977_v51, 1 }
 0x18a   :  { %v1147_v13 = vadd.f32 %v1144_v10, %v1079_v11  ;;  %v1426_v10 = vperm.slane %v1993_v50, 2 }
 0x18e   :  { %v1198_v7 = vpop.f32.mrf.mxu0  ;;  %v1211_v41 = vpop.f32.mrf.mxu1 }
 0x18f   :  { %v1132_v56 = vpop.f32.mrf.mxu2  ;;  %v1145_v57 = vpop.f32.mrf.mxu3  ;;  %v1212_v12 = vadd.f32 %v1211_v41, %v1198_v7 }
 0x191   :  { %v1215_v18 = vadd.f32 %v1212_v12, %v1147_v13 }
 0x196   :  { %v1200_v14 = vpop.f32.mrf.mxu0  ;;  %v1213_v15 = vpop.f32.mrf.mxu1 }
 0x197   :  { %v1266_v16 = vpop.f32.mrf.mxu2  ;;  %v1279_v17 = vpop.f32.mrf.mxu3  ;;  %v1341_v14 = vperm.slane %v1977_v51, 2 }
 0x198   :  { %v1280_v19 = vadd.f32 %v1279_v17, %v1266_v16 }
 0x19a   :  { %v1283_v21 = vadd.f32 %v1280_v19, %v1215_v18 }
 0x19c   :  { %v1285_v22 = vadd.f32 %v1284_v20, %v1283_v21  ;;  %v1321_v29 = vpop.permute.xlu0 %1320 }
 0x19d   :  { %v2826_v31 = vmul.f32 %v1321_v29, %v2782_v44  ;;  %v1986_v44 = vld [vmem:[%s2909_s4 + $0x88] sm:$0xff] }
 0x19e   :  { %v1286_v23 = vmax.f32 %v1285_v22, 0.0  ;;  %1487 = vmatpush.msra.mxu2 %v1986_v44  ;;  %v2119_v44 = vmov 32.0  }
 0x19f   :  { %v1268_v24 = vpop.f32.mrf.mxu2  ;;  %v1281_v25 = vpop.f32.mrf.mxu3 }
 0x1a0   :  { %1976 = vmatmul.msk.f32.vlgmr.msrb.gmra.mxu0 %vm1292_vm5, %v1286_v23  ;;  %1488 = vmatpush.msra.mxu2 %v1983_v45 }
 0x1a8   :  { %1994 = vmatmul.msk.f32.vlgmr.msra.gmra.mxu0 %vm1292_vm5, %v2826_v31 }
 0x21d   :  { %v1313_v47 = vpop.f32.mrf.mxu0 }
 0x21e   :  { %v1314_v48 = vadd.f32 %v1313_v47, %v1291_v46 }
 0x220   :  { %v1316_v49 = vmax.f32 %v1314_v48, 0.0 }
 0x222   :  { %1978 = vmatmul.msk.f32.vlgmr.msrb.gmra.mxu1 %vm1292_vm5, %v1316_v49  ;;  %1979 = vmatmul.msk.f32.vlgmr.msrb.gmra.mxu2 %vm1292_vm5, %v1316_v49 }
 0x223   :  { %1980 = vmatmul.msk.f32.vlgmr.msrb.gmra.mxu3 %vm1292_vm5, %v1316_v49 }
 0x225   :  { %v1450_v53 = vpop.f32.mrf.mxu0 }
 0x226   :  { %v1451_v55 = vadd.f32 %v1450_v53, %v1424_v52 }
 0x22a   :  { %1995 = vmatmul.msk.f32.vlgmr.msra.gmra.mxu1 %vm1292_vm5, %v2826_v31  ;;  %1996 = vmatmul.msk.f32.vlgmr.msra.gmra.mxu2 %vm1292_vm5, %v2826_v31 }
 0x29f   :  { %v1365_v58 = vpop.f32.mrf.mxu1 }
 0x2a0   :  { %v1366_v59 = vadd.f32 %v1365_v58, %v1339_v54 }
 0x2a2   :  { %v1493_v60 = vadd.f32 %v1451_v55, %v1366_v59 }
 0x2a4   :  { %v1997_v61 = vmul.f32 -1.442695, %v1493_v60 }
 0x2a5   :  { %v1385_v0 = vpop.f32.mrf.mxu2 }
 0x2a6   :  { %2077 = vpow2.f32 %v1997_v61  ;;  %v1386_v2 = vadd.f32 %v1385_v0, %v1340_v62  ;;  %v1405_v17 = vpop.f32.mrf.mxu3 }
 0x2a7   :  { %v1470_v1 = vpop.f32.mrf.mxu1  ;;  %v1406_v23 = vadd.f32 %v1405_v17, %v1341_v14 }
 0x2a8   :  { %v1471_v3 = vadd.f32 %v1470_v1, %v1425_v63 }
 0x2aa   :  { %v1494_v4 = vadd.f32 %v1471_v3, %v1386_v2  ;;  %v1571_v2 = vld [vmem:[%s2910_s5 + $0x4] ss:$0 sm:$0xff] }
 0x2ac   :  { %v2078_v5 = vpop.eup %2077  ;;  %v1998_v6 = vmul.f32 -1.442695, %v1494_v4  ;;  %v1573_v4 = vld [vmem:[%s2910_s5 + $0x5] ss:$0 sm:$0xff] }
 0x2ad   :  { %v1498_v7 = vadd.f32 1.0, %v2078_v5  ;;  %v1490_v13 = vpop.f32.mrf.mxu2 }
 0x2ae   :  { %2079 = vpow2.f32 %v1998_v6  ;;  %v1491_v20 = vadd.f32 %v1490_v13, %v1426_v10  ;;  %v1575_v6 = vld [vmem:[%s2910_s5 + $0x6] ss:$0 sm:$0xff] }
 0x2af   :  { %2081 = vrcp.f32 %v1498_v7  ;;  %v1510_v9 = vand.u32 2147483648, %v1498_v7  ;;  %v1508_v12 = vand.u32 2147483647, %v1498_v7  ;;  %vm1504_vm7 = vweird.f32 %v1498_v7 }
 0x2b1   :  { %v1511_v18 = vor.u32 1.1754944e-38, %v1510_v9  ;;  %vm1509_vm9 = vcmp.eq.f32.partialorder %v1508_v12, 8.507059e+37 }
 0x2b4   :  { %v2080_v41 = vpop.eup %2079 }
 0x2b5   :  { %v2082_v56 = vpop.eup %2081  ;;  %v1517_v57 = vadd.f32 1.0, %v2080_v41 }
 0x2b6   :  { %v1500_v8 = vmul.f32 %v2082_v56, %v1498_v7  ;;  %vm1505_vm6 = vweird.f32 %v2082_v56 }
 0x2b7   :  { %2083 = vrcp.f32 %v1517_v57  ;;  %vm1506_vm8 = vmor %vm1504_vm7, %vm1505_vm6  ;;  %v1529_v26 = vand.u32 2147483648, %v1517_v57  ;;  %v1527_v29 = vand.u32 2147483647, %v1517_v57  ;;  %vm1523_vm11 = vweird.f32 %v1517_v57 }
 0x2b8   :  { %v1501_v40 = vsub.f32 1.0, %v1500_v8 }
 0x2b9   :  { %v1530_v32 = vor.u32 1.1754944e-38, %v1529_v26  ;;  %vm1528_vm13 = vcmp.eq.f32.partialorder %v1527_v29, 8.507059e+37 }
 0x2ba   :  { %v1502_v11 = vmul.f32 %v2082_v56, %v1501_v40 }
 0x2bc   :  { %v1503_v15 = vadd.f32 %v2082_v56, %v1502_v11 }
 0x2bd   :  { %v2084_v16 = vpop.eup %2083 }
 0x2be   :  { %v1519_v19 = vmul.f32 %v2084_v16, %v1517_v57  ;;  %v1507_v21 = vsel %vm1506_vm8, %v2082_v56, %v1503_v15  ;;  %vm1524_vm10 = vweird.f32 %v2084_v16  ;;  %v1580_v57 = vld [vmem:[%s2910_s5 + $0x7] ss:$0 sm:$0xff] }
 0x2bf   :  { %v1512_v22 = vsel %vm1509_vm9, %v1511_v18, %v1507_v21  ;;  %vm1525_vm12 = vmor %vm1523_vm11, %vm1524_vm10 }
 0x2c0   :  { %v1520_v24 = vsub.f32 1.0, %v1519_v19  ;;  %v1533_v25 = vmul.f32 %v1512_v22, %v1491_v20 }
 0x2c2   :  { %v1534_v27 = vadd.f32 %v1533_v25, %v1406_v23  ;;  %v1521_v28 = vmul.f32 %v2084_v16, %v1520_v24 }
 0x2c4   :  { %2085 = vtanh.f32 %v1534_v27  ;;  %v1522_v30 = vadd.f32 %v2084_v16, %v1521_v28 }
 0x2c5   :  { %2087 = vrcp.f32 %v2119_v44 }
 0x2c6   :  { %v1526_v33 = vsel %vm1525_vm12, %v2084_v16, %v1522_v30 }
 0x2c7   :  { %v1531_v34 = vsel %vm1528_vm13, %v1530_v32, %v1526_v33 }
 0x2c8   :  { %v1536_v35 = vsub.f32 1.0, %v1531_v34  ;;  %v1538_v38 = vmul.f32 %v1531_v34, %v2826_v31 }
 0x2ca   :  { %v2086_v36 = vpop.eup %2085 }
 0x2cb   :  { %v1537_v37 = vmul.f32 %v2086_v36, %v1536_v35  ;;  %v2088_v42 = vpop.eup %2087 }
 0x2cc   :  { %v1546_v45 = vmul.f32 32.0, %v2088_v42  ;;  %vm1550_vm15 = vweird.f32 %v2088_v42 }
 0x2cd   :  { %v1539_v43 = vadd.f32 %v1538_v38, %v1537_v37 }
 0x2ce   :  { %v1547_v46 = vsub.f32 1.0, %v1546_v45 }
 0x2cf   :  { %v1542_v39 = vsel %vm1540_vm14, %v1539_v43, 0.0  ;;  %1541 = vst.msk [vmem:[#allocation2] sm:$0x3] %vm1540_vm14, %v1539_v43 }
 0x2d0   :  { %1543 = vadd.xlane.f32.xlu0 %v1542_v39  ;;  %v1548_v47 = vmul.f32 %v2088_v42, %v1547_v46  ;;  %1596 = dma.vmem_to_hbm [thread:$0]  %s1592_s26, 32, %s1594_s25, [#allocation3]  }
 0x2d2   :  { %v1549_v48 = vadd.f32 %v2088_v42, %v1548_v47 }
 0x2d4   :  { %v1551_v49 = vsel %vm1550_vm15, %v2088_v42, %v1549_v48 }
 0x343   :  { %v1544_v50 = vpop.xlane.xlu0 %1543 }
 0x344   :  { %v1552_v51 = vmul.f32 %v1551_v49, %v1544_v50 }
 0x346   :  { %v1553_v52 = vsub.f32 %v1539_v43, %v1552_v51 }
 0x348   :  { %v1554_v31 = vmul.f32 %v1553_v52, %v1553_v52 }
 0x34a   :  { %v1555_v53 = vsel %vm1540_vm14, %v1554_v31, 0.0 }
 0x34b   :  { %1556 = vadd.xlane.f32.xlu1 %v1555_v53 }
 0x3be   :  { %v1557_v54 = vpop.xlane.xlu1 %1556 }
 0x3bf   :  { %v1558_v55 = vmul.f32 %v1557_v54, %v1551_v49 }
 0x3c1   :  { %v1559_v58 = vadd.f32 1e-05, %v1558_v55 }
 0x3c3   :  { %2089 = vrsqrt.f32 %v1559_v58  ;;  %vm1566_vm1 = vweird.f32 %v1559_v58 }
 0x3c9   :  { %v2090_v59 = vpop.eup %2089 }
 0x3ca   :  { %v1561_v60 = vmul.f32 %v2090_v59, %v1559_v58  ;;  %vm1567_vm0 = vweird.f32 %v2090_v59 }
 0x3cb   :  { %vm1568_vm2 = vmor %vm1566_vm1, %vm1567_vm0 }
 0x3cc   :  { %v1562_v61 = vmul.f32 %v2090_v59, %v1561_v60 }
 0x3ce   :  { %v1563_v62 = vmul.f32 0.5, %v1562_v61 }
 0x3d0   :  { %v1564_v63 = vsub.f32 1.5, %v1563_v62 }
 0x3d2   :  { %v1565_v0 = vmul.f32 %v2090_v59, %v1564_v63 }
 0x3d4   :  { %v1569_v1 = vsel %vm1568_vm2, %v2090_v59, %v1565_v0 }
 0x3d5   :  { %v1570_v3 = vmul.f32 %v1569_v1, %v1553_v52 }
 0x3d7   :  { %v1572_v5 = vmul.f32 %v1571_v2, %v1570_v3 }
 0x3d9   :  { %v1574_v7 = vadd.f32 %v1573_v4, %v1572_v5 }
 0x3db   :  { %v1576_v41 = vmul.f32 %v1575_v6, %v1574_v7 }
 0x3dd   :  { %v1577_v56 = vsel %vm1540_vm14, %v1576_v41, 0.0 }
 0x3de   :  { %1578 = vadd.xlane.f32.xlu1 %v1577_v56 }
 0x451   :  { %v1579_v8 = vpop.xlane.xlu1 %1578 }
 0x452   :  { %v1581_v40 = vadd.f32 %v1580_v57, %v1579_v8 }
 0x454   :  { %1583 = vst.msk [vmem:[%s2912_s7] sm:$0x3] %vm1582_vm3, %v1581_v40 }
 0x455   :  { %2115 = dma.done.wait [#allocation3], 32  }
 0x456   :  { %2116 = vsyncadd [#allocation3], 4294967264 }
 0x457   :  { %1603 = vsyncpa [#allocation3], 1 }

</bundles_post_ra>
